<compile_context>
chip_gen: v5e
topology: v5e:2x2
jax: 0.10.0
libtpu: 0.0.40
codegen_flags: <defaults>
</compile_context>

<pallas_src>
import functools
import math

import jax
import jax.numpy as jnp
from jax import lax
from jax.experimental import pallas as pl
from jax.experimental.pallas import tpu as pltpu

_SQRT_HALF = 0.7071067811865476  # 1/sqrt(2), for exact (erf) GELU


# ------------------------------ fused kernel ------------------------------- #

def _camera_attention_block_kernel(x_ref, cam_ref,
                                   wqkv_ref, bqkv_ref,
                                   wo_ref, bo_ref,
                                   g2_ref, beta2_ref,
                                   w1_ref, b1_ref, w2_ref, b2_ref,
                                   o_ref, *, num_heads):
    BV, T, D = x_ref.shape
    M = BV * T
    Dh = D // num_heads
    scale = 1.0 / math.sqrt(Dh)

    x = x_ref[...].astype(jnp.float32)          # (BV, T, D)
    x2 = x.reshape(M, D)                        # flattened rows for the GEMMs
    cam = cam_ref[...].astype(jnp.float32)      # (BV, D)

    # NOTE: reference computes norm1(features) but never uses it; omitted.

    # --- fused QKV projection (single wide GEMM, f32 accumulation) ---
    wqkv = wqkv_ref[...]
    qkv2 = jnp.dot(x2, wqkv, preferred_element_type=jnp.float32) + bqkv_ref[...]   # (M, 3D)
    # Camera positional embedding folded into the Q/K bias (per-view row bias),
    # instead of materializing a (BV, T, D) broadcast + add of the activations.
    cam_qkv = jnp.dot(cam, wqkv, preferred_element_type=jnp.float32)               # (BV, 3D)

    # --- multi-head attention, heads unrolled in-register ---
    head_outs = []
    for h in range(num_heads):
        q_lo = h * Dh
        q_h = (qkv2[:, q_lo:q_lo + Dh].reshape(BV, T, Dh)
               + cam_qkv[:, q_lo:q_lo + Dh][:, None, :])
        k_lo = D + h * Dh
        k_h = (qkv2[:, k_lo:k_lo + Dh].reshape(BV, T, Dh)
               + cam_qkv[:, k_lo:k_lo + Dh][:, None, :])
        v_lo = 2 * D + h * Dh
        v_h = qkv2[:, v_lo:v_lo + Dh].reshape(BV, T, Dh)    # value: no pos-embed

        # batched QK^T without an explicit transpose of K
        s = jnp.einsum('bqd,bkd->bqk', q_h, k_h,
                       preferred_element_type=jnp.float32) * scale
        s = s - jnp.max(s, axis=-1, keepdims=True)
        p = jnp.exp(s)
        # softmax denominator via the EUP approximate reciprocal (free VLIW slot)
        p = p * pl.reciprocal(jnp.sum(p, axis=-1, keepdims=True), approx=True)
        head_outs.append(jnp.einsum('bqk,bkd->bqd', p, v_h,
                                    preferred_element_type=jnp.float32))

    attn = jnp.concatenate(head_outs, axis=-1).reshape(M, D)           # (M, D)
    attn = jnp.dot(attn, wo_ref[...], preferred_element_type=jnp.float32) + bo_ref[...]

    # --- residual 1 (attention dropout = identity) ---
    x2 = x2 + attn

    # --- norm2 (LayerNorm, eps = 1e-5 to match PyTorch) ---
    mu = jnp.mean(x2, axis=-1, keepdims=True)
    var = jnp.mean(jnp.square(x2 - mu), axis=-1, keepdims=True)
    xn = (x2 - mu) * lax.rsqrt(var + 1e-5) * g2_ref[...] + beta2_ref[...]

    # --- feedforward: Linear -> exact GELU -> Linear (dropout = identity) ---
    h1 = jnp.dot(xn, w1_ref[...], preferred_element_type=jnp.float32) + b1_ref[...]
    h1 = 0.5 * h1 * (1.0 + lax.erf(h1 * _SQRT_HALF))
    ff = jnp.dot(h1, w2_ref[...], preferred_element_type=jnp.float32) + b2_ref[...]

    # --- residual 2 + store ---
    o_ref[...] = (x2 + ff).reshape(BV, T, D).astype(o_ref.dtype)


def camera_attention_block(params, features, cam_embeddings, *, num_heads):
    """features: (B*V, T, D); cam_embeddings: (B*V, D) or None."""
    BV, T, D = features.shape
    if cam_embeddings is None:
        cam_embeddings = jnp.zeros((BV, D), features.dtype)
    Dff = params['ff_w1'].shape[1]

    def full(shape):
        return pl.BlockSpec(shape, lambda i, _s=shape: (0,) * len(_s))

    kernel = functools.partial(_camera_attention_block_kernel, num_heads=num_heads)
    return pl.pallas_call(
        kernel,
        out_shape=jax.ShapeDtypeStruct((BV, T, D), features.dtype),
        grid=(1,),
        in_specs=[
            full((BV, T, D)),        # features
            full((BV, D)),           # camera embeddings
            full((D, 3 * D)),        # Wq|Wk|Wv concatenated
            full((1, 3 * D)),        # bq|bk|bv
            full((D, D)),            # out_proj weight
            full((1, D)),            # out_proj bias
            full((1, D)),            # norm2 gamma
            full((1, D)),            # norm2 beta
            full((D, Dff)),          # ffn w1
            full((1, Dff)),          # ffn b1
            full((Dff, D)),          # ffn w2
            full((1, D)),            # ffn b2
        ],
        out_specs=full((BV, T, D)),
        compiler_params=pltpu.CompilerParams(dimension_semantics=("arbitrary",)),
    )(features, cam_embeddings,
      params['wqkv'], params['bqkv'].reshape(1, 3 * D),
      params['wo'], params['bo'].reshape(1, D),
      params['ln2_g'].reshape(1, D), params['ln2_b'].reshape(1, D),
      params['ff_w1'], params['ff_b1'].reshape(1, Dff),
      params['ff_w2'], params['ff_b2'].reshape(1, D))


# --------------------------- params & pure-JAX ref -------------------------- #

def init_params(key, feature_dim):
    D = feature_dim
    keys = jax.random.split(key, 4)

    def lin(k, din, dout, scale=0.05):
        kw, kb = jax.random.split(k)
        return (scale * jax.random.normal(kw, (din, dout), jnp.float32),
                scale * jax.random.normal(kb, (dout,), jnp.float32))

    p = {}
    p['wqkv'], p['bqkv'] = lin(keys[0], D, 3 * D)     # MHA in_proj (q|k|v)
    p['wo'], p['bo'] = lin(keys[1], D, D)             # MHA out_proj
    p['ln2_g'] = jnp.ones((D,), jnp.float32)          # norm2
    p['ln2_b'] = jnp.zeros((D,), jnp.float32)
    p['ff_w1'], p['ff_b1'] = lin(keys[2], D, 4 * D)   # feedforward
    p['ff_w2'], p['ff_b2'] = lin(keys[3], 4 * D, D)
    return p


def reference_forward(params, features, cam_embeddings, num_heads):
    """Plain-JAX reference mirroring the PyTorch module (eval mode)."""
    BV, T, D = features.shape
    Dh = D // num_heads
    cam = cam_embeddings[:, None, :]
    wqkv, bqkv = params['wqkv'], params['bqkv']
    q = (features + cam) @ wqkv[:, :D] + bqkv[:D]
    k = (features + cam) @ wqkv[:, D:2 * D] + bqkv[D:2 * D]
    v = features @ wqkv[:, 2 * D:] + bqkv[2 * D:]

    def split(a):
        return a.reshape(BV, T, num_heads, Dh).transpose(0, 2, 1, 3)

    qh, kh, vh = split(q), split(k), split(v)
    s = jnp.einsum('bhqd,bhkd->bhqk', qh, kh) / math.sqrt(Dh)
    p = jax.nn.softmax(s, axis=-1)
    o = jnp.einsum('bhqk,bhkd->bhqd', p, vh).transpose(0, 2, 1, 3).reshape(BV, T, D)
    attn = o @ params['wo'] + params['bo']
    x = features + attn
    mu = x.mean(-1, keepdims=True)
    var = ((x - mu) ** 2).mean(-1, keepdims=True)
    xn = (x - mu) / jnp.sqrt(var + 1e-5) * params['ln2_g'] + params['ln2_b']
    h1 = xn @ params['ff_w1'] + params['ff_b1']
    h1 = 0.5 * h1 * (1.0 + lax.erf(h1 * _SQRT_HALF))
    ff = h1 @ params['ff_w2'] + params['ff_b2']
    return x + ff


# ----------------------------------- main ----------------------------------- #

if __name__ == "__main__":
    FEATURE_DIM = 32
    NUM_HEADS = 4        # head_dim = 8
    B, V, T = 2, 3, 8    # features are [B*V, T, D] as in the reference
    BV = B * V

    key = jax.random.PRNGKey(0)
    kp, kf, kc = jax.random.split(key, 3)
    params = init_params(kp, FEATURE_DIM)
    features = jax.random.normal(kf, (BV, T, FEATURE_DIM), jnp.float32)
    cam_embeddings = jax.random.normal(kc, (BV, FEATURE_DIM), jnp.float32)

    fwd = jax.jit(functools.partial(camera_attention_block, num_heads=NUM_HEADS))
    out = fwd(params, features, cam_embeddings)
    jax.block_until_ready(out)
    assert out.shape == (BV, T, FEATURE_DIM), out.shape

    # correctness vs pure-JAX reference (approx softmax reciprocal -> loose tol)
    ref = reference_forward(params, features, cam_embeddings, NUM_HEADS)
    max_err = float(jnp.max(jnp.abs(out - ref)))
    assert max_err < 2e-2, f"max abs error {max_err}"

    print("KERNEL_OK")
</pallas_src>

<mosaic_0001>
module attributes {stable_mosaic.version = 11 : i64} {
  func.func @_camera_attention_block_kernel(%arg0: i32, %arg1: memref<6x8x32xf32, #tpu.memory_space<vmem>>, %arg2: memref<6x32xf32, #tpu.memory_space<vmem>>, %arg3: memref<32x96xf32, #tpu.memory_space<vmem>>, %arg4: memref<1x96xf32, #tpu.memory_space<vmem>>, %arg5: memref<32x32xf32, #tpu.memory_space<vmem>>, %arg6: memref<1x32xf32, #tpu.memory_space<vmem>>, %arg7: memref<1x32xf32, #tpu.memory_space<vmem>>, %arg8: memref<1x32xf32, #tpu.memory_space<vmem>>, %arg9: memref<32x128xf32, #tpu.memory_space<vmem>>, %arg10: memref<1x128xf32, #tpu.memory_space<vmem>>, %arg11: memref<128x32xf32, #tpu.memory_space<vmem>>, %arg12: memref<1x32xf32, #tpu.memory_space<vmem>>, %arg13: memref<6x8x32xf32, #tpu.memory_space<vmem>>) attributes {dimension_semantics = [#tpu.dimension_semantics<arbitrary>], iteration_bounds = array<i64: 1>, scalar_prefetch = 0 : i64, scratch_operands = 0 : i64, tpu.core_type = #tpu.core_type<tc>, window_params = [{pipeline_mode = #tpu.pipeline_mode<synchronous>, transform_indices = @transform_0, window_bounds = array<i64: 6, 8, 32>}, {pipeline_mode = #tpu.pipeline_mode<synchronous>, transform_indices = @transform_1, window_bounds = array<i64: 6, 32>}, {pipeline_mode = #tpu.pipeline_mode<synchronous>, transform_indices = @transform_2, window_bounds = array<i64: 32, 96>}, {pipeline_mode = #tpu.pipeline_mode<synchronous>, transform_indices = @transform_3, window_bounds = array<i64: 1, 96>}, {pipeline_mode = #tpu.pipeline_mode<synchronous>, transform_indices = @transform_4, window_bounds = array<i64: 32, 32>}, {pipeline_mode = #tpu.pipeline_mode<synchronous>, transform_indices = @transform_5, window_bounds = array<i64: 1, 32>}, {pipeline_mode = #tpu.pipeline_mode<synchronous>, transform_indices = @transform_6, window_bounds = array<i64: 1, 32>}, {pipeline_mode = #tpu.pipeline_mode<synchronous>, transform_indices = @transform_7, window_bounds = array<i64: 1, 32>}, {pipeline_mode = #tpu.pipeline_mode<synchronous>, transform_indices = @transform_8, window_bounds = array<i64: 32, 128>}, {pipeline_mode = #tpu.pipeline_mode<synchronous>, transform_indices = @transform_9, window_bounds = array<i64: 1, 128>}, {pipeline_mode = #tpu.pipeline_mode<synchronous>, transform_indices = @transform_10, window_bounds = array<i64: 128, 32>}, {pipeline_mode = #tpu.pipeline_mode<synchronous>, transform_indices = @transform_11, window_bounds = array<i64: 1, 32>}, {pipeline_mode = #tpu.pipeline_mode<synchronous>, transform_indices = @transform_12, window_bounds = array<i64: 6, 8, 32>}]} {
    %c0 = arith.constant 0 : index
    %c0_0 = arith.constant 0 : index
    %c0_1 = arith.constant 0 : index
    %0 = vector.load %arg1[%c0, %c0_0, %c0_1] : memref<6x8x32xf32, #tpu.memory_space<vmem>>, vector<6x8x32xf32>
    %1 = vector.shape_cast %0 : vector<6x8x32xf32> to vector<48x32xf32>
    %c0_2 = arith.constant 0 : index
    %c0_3 = arith.constant 0 : index
    %2 = vector.load %arg2[%c0_2, %c0_3] : memref<6x32xf32, #tpu.memory_space<vmem>>, vector<6x32xf32>
    %c0_4 = arith.constant 0 : index
    %c0_5 = arith.constant 0 : index
    %3 = vector.load %arg3[%c0_4, %c0_5] : memref<32x96xf32, #tpu.memory_space<vmem>>, vector<32x96xf32>
    %cst = arith.constant dense<0.000000e+00> : vector<48x96xf32>
    %4 = tpu.matmul %1, %3, %cst {dimension_numbers = #tpu.dot_dimension_numbers<[1], [0], [0], [1], [0, 0, 1, 1], [], []>} : vector<48x32xf32>, vector<32x96xf32>, vector<48x96xf32> -> vector<48x96xf32>
    %c0_6 = arith.constant 0 : index
    %c0_7 = arith.constant 0 : index
    %5 = vector.load %arg4[%c0_6, %c0_7] : memref<1x96xf32, #tpu.memory_space<vmem>>, vector<1x96xf32>
    %6 = vector.broadcast %5 : vector<1x96xf32> to vector<48x96xf32>
    %7 = arith.addf %4, %6 : vector<48x96xf32>
    %cst_8 = arith.constant dense<0.000000e+00> : vector<6x96xf32>
    %8 = tpu.matmul %2, %3, %cst_8 {dimension_numbers = #tpu.dot_dimension_numbers<[1], [0], [0], [1], [0, 0, 1, 1], [], []>} : vector<6x32xf32>, vector<32x96xf32>, vector<6x96xf32> -> vector<6x96xf32>
    %9 = vector.extract_strided_slice %7 {offsets = [0, 0], sizes = [48, 8], strides = [1, 1]} : vector<48x96xf32> to vector<48x8xf32>
    %10 = vector.shape_cast %9 : vector<48x8xf32> to vector<6x8x8xf32>
    %11 = vector.extract_strided_slice %8 {offsets = [0, 0], sizes = [6, 8], strides = [1, 1]} : vector<6x96xf32> to vector<6x8xf32>
    %12 = vector.shape_cast %11 : vector<6x8xf32> to vector<6x1x8xf32>
    %13 = vector.broadcast %12 : vector<6x1x8xf32> to vector<6x8x8xf32>
    %14 = arith.addf %10, %13 : vector<6x8x8xf32>
    %15 = vector.extract_strided_slice %7 {offsets = [0, 32], sizes = [48, 8], strides = [1, 1]} : vector<48x96xf32> to vector<48x8xf32>
    %16 = vector.shape_cast %15 : vector<48x8xf32> to vector<6x8x8xf32>
    %17 = vector.extract_strided_slice %8 {offsets = [0, 32], sizes = [6, 8], strides = [1, 1]} : vector<6x96xf32> to vector<6x8xf32>
    %18 = vector.shape_cast %17 : vector<6x8xf32> to vector<6x1x8xf32>
    %19 = vector.broadcast %18 : vector<6x1x8xf32> to vector<6x8x8xf32>
    %20 = arith.addf %16, %19 : vector<6x8x8xf32>
    %21 = vector.extract_strided_slice %7 {offsets = [0, 64], sizes = [48, 8], strides = [1, 1]} : vector<48x96xf32> to vector<48x8xf32>
    %22 = vector.shape_cast %21 : vector<48x8xf32> to vector<6x8x8xf32>
    "tpu.trace_start"() <{level = 10 : i32, message = "bqd,bkd->bqk"}> : () -> ()
    %cst_9 = arith.constant dense<0.000000e+00> : vector<6x8x8xf32>
    %23 = tpu.matmul %14, %20, %cst_9 {dimension_numbers = #tpu.dot_dimension_numbers<[2], [2], [1], [1], [0, 0, 0, 1, 1, 1], [0], [0]>} : vector<6x8x8xf32>, vector<6x8x8xf32>, vector<6x8x8xf32> -> vector<6x8x8xf32>
    "tpu.trace_stop"() : () -> ()
    %cst_10 = arith.constant 0.353553385 : f32
    %24 = vector.broadcast %cst_10 : f32 to vector<6x8x8xf32>
    %25 = arith.mulf %23, %24 : vector<6x8x8xf32>
    %cst_11 = arith.constant dense<0xFF800000> : vector<6x8xf32>
    %26 = vector.multi_reduction <maximumf>, %25, %cst_11 [2] : vector<6x8x8xf32> to vector<6x8xf32>
    %27 = vector.shape_cast %26 : vector<6x8xf32> to vector<6x8x1xf32>
    %28 = vector.broadcast %27 : vector<6x8x1xf32> to vector<6x8x8xf32>
    %29 = arith.subf %25, %28 : vector<6x8x8xf32>
    %30 = math.exp %29 : vector<6x8x8xf32>
    %cst_12 = arith.constant dense<0.000000e+00> : vector<6x8xf32>
    %31 = vector.multi_reduction <add>, %30, %cst_12 [2] : vector<6x8x8xf32> to vector<6x8xf32>
    %32 = vector.shape_cast %31 : vector<6x8xf32> to vector<6x8x1xf32>
    %33 = tpu.reciprocal %32 {approx = true} : vector<6x8x1xf32> -> vector<6x8x1xf32>
    %34 = vector.broadcast %33 : vector<6x8x1xf32> to vector<6x8x8xf32>
    %35 = arith.mulf %30, %34 : vector<6x8x8xf32>
    "tpu.trace_start"() <{level = 10 : i32, message = "bqk,bkd->bqd"}> : () -> ()
    %cst_13 = arith.constant dense<0.000000e+00> : vector<6x8x8xf32>
    %36 = tpu.matmul %35, %22, %cst_13 {dimension_numbers = #tpu.dot_dimension_numbers<[2], [1], [1], [2], [0, 0, 0, 1, 1, 2], [0], [0]>} : vector<6x8x8xf32>, vector<6x8x8xf32>, vector<6x8x8xf32> -> vector<6x8x8xf32>
    "tpu.trace_stop"() : () -> ()
    %37 = vector.extract_strided_slice %7 {offsets = [0, 8], sizes = [48, 8], strides = [1, 1]} : vector<48x96xf32> to vector<48x8xf32>
    %38 = vector.shape_cast %37 : vector<48x8xf32> to vector<6x8x8xf32>
    %39 = vector.extract_strided_slice %8 {offsets = [0, 8], sizes = [6, 8], strides = [1, 1]} : vector<6x96xf32> to vector<6x8xf32>
    %40 = vector.shape_cast %39 : vector<6x8xf32> to vector<6x1x8xf32>
    %41 = vector.broadcast %40 : vector<6x1x8xf32> to vector<6x8x8xf32>
    %42 = arith.addf %38, %41 : vector<6x8x8xf32>
    %43 = vector.extract_strided_slice %7 {offsets = [0, 40], sizes = [48, 8], strides = [1, 1]} : vector<48x96xf32> to vector<48x8xf32>
    %44 = vector.shape_cast %43 : vector<48x8xf32> to vector<6x8x8xf32>
    %45 = vector.extract_strided_slice %8 {offsets = [0, 40], sizes = [6, 8], strides = [1, 1]} : vector<6x96xf32> to vector<6x8xf32>
    %46 = vector.shape_cast %45 : vector<6x8xf32> to vector<6x1x8xf32>
    %47 = vector.broadcast %46 : vector<6x1x8xf32> to vector<6x8x8xf32>
    %48 = arith.addf %44, %47 : vector<6x8x8xf32>
    %49 = vector.extract_strided_slice %7 {offsets = [0, 72], sizes = [48, 8], strides = [1, 1]} : vector<48x96xf32> to vector<48x8xf32>
    %50 = vector.shape_cast %49 : vector<48x8xf32> to vector<6x8x8xf32>
    "tpu.trace_start"() <{level = 10 : i32, message = "bqd,bkd->bqk"}> : () -> ()
    %cst_14 = arith.constant dense<0.000000e+00> : vector<6x8x8xf32>
    %51 = tpu.matmul %42, %48, %cst_14 {dimension_numbers = #tpu.dot_dimension_numbers<[2], [2], [1], [1], [0, 0, 0, 1, 1, 1], [0], [0]>} : vector<6x8x8xf32>, vector<6x8x8xf32>, vector<6x8x8xf32> -> vector<6x8x8xf32>
    "tpu.trace_stop"() : () -> ()
    %cst_15 = arith.constant 0.353553385 : f32
    %52 = vector.broadcast %cst_15 : f32 to vector<6x8x8xf32>
    %53 = arith.mulf %51, %52 : vector<6x8x8xf32>
    %cst_16 = arith.constant dense<0xFF800000> : vector<6x8xf32>
    %54 = vector.multi_reduction <maximumf>, %53, %cst_16 [2] : vector<6x8x8xf32> to vector<6x8xf32>
    %55 = vector.shape_cast %54 : vector<6x8xf32> to vector<6x8x1xf32>
    %56 = vector.broadcast %55 : vector<6x8x1xf32> to vector<6x8x8xf32>
    %57 = arith.subf %53, %56 : vector<6x8x8xf32>
    %58 = math.exp %57 : vector<6x8x8xf32>
    %cst_17 = arith.constant dense<0.000000e+00> : vector<6x8xf32>
    %59 = vector.multi_reduction <add>, %58, %cst_17 [2] : vector<6x8x8xf32> to vector<6x8xf32>
    %60 = vector.shape_cast %59 : vector<6x8xf32> to vector<6x8x1xf32>
    %61 = tpu.reciprocal %60 {approx = true} : vector<6x8x1xf32> -> vector<6x8x1xf32>
    %62 = vector.broadcast %61 : vector<6x8x1xf32> to vector<6x8x8xf32>
    %63 = arith.mulf %58, %62 : vector<6x8x8xf32>
    "tpu.trace_start"() <{level = 10 : i32, message = "bqk,bkd->bqd"}> : () -> ()
    %cst_18 = arith.constant dense<0.000000e+00> : vector<6x8x8xf32>
    %64 = tpu.matmul %63, %50, %cst_18 {dimension_numbers = #tpu.dot_dimension_numbers<[2], [1], [1], [2], [0, 0, 0, 1, 1, 2], [0], [0]>} : vector<6x8x8xf32>, vector<6x8x8xf32>, vector<6x8x8xf32> -> vector<6x8x8xf32>
    "tpu.trace_stop"() : () -> ()
    %65 = vector.extract_strided_slice %7 {offsets = [0, 16], sizes = [48, 8], strides = [1, 1]} : vector<48x96xf32> to vector<48x8xf32>
    %66 = vector.shape_cast %65 : vector<48x8xf32> to vector<6x8x8xf32>
    %67 = vector.extract_strided_slice %8 {offsets = [0, 16], sizes = [6, 8], strides = [1, 1]} : vector<6x96xf32> to vector<6x8xf32>
    %68 = vector.shape_cast %67 : vector<6x8xf32> to vector<6x1x8xf32>
    %69 = vector.broadcast %68 : vector<6x1x8xf32> to vector<6x8x8xf32>
    %70 = arith.addf %66, %69 : vector<6x8x8xf32>
    %71 = vector.extract_strided_slice %7 {offsets = [0, 48], sizes = [48, 8], strides = [1, 1]} : vector<48x96xf32> to vector<48x8xf32>
    %72 = vector.shape_cast %71 : vector<48x8xf32> to vector<6x8x8xf32>
    %73 = vector.extract_strided_slice %8 {offsets = [0, 48], sizes = [6, 8], strides = [1, 1]} : vector<6x96xf32> to vector<6x8xf32>
    %74 = vector.shape_cast %73 : vector<6x8xf32> to vector<6x1x8xf32>
    %75 = vector.broadcast %74 : vector<6x1x8xf32> to vector<6x8x8xf32>
    %76 = arith.addf %72, %75 : vector<6x8x8xf32>
    %77 = vector.extract_strided_slice %7 {offsets = [0, 80], sizes = [48, 8], strides = [1, 1]} : vector<48x96xf32> to vector<48x8xf32>
    %78 = vector.shape_cast %77 : vector<48x8xf32> to vector<6x8x8xf32>
    "tpu.trace_start"() <{level = 10 : i32, message = "bqd,bkd->bqk"}> : () -> ()
    %cst_19 = arith.constant dense<0.000000e+00> : vector<6x8x8xf32>
    %79 = tpu.matmul %70, %76, %cst_19 {dimension_numbers = #tpu.dot_dimension_numbers<[2], [2], [1], [1], [0, 0, 0, 1, 1, 1], [0], [0]>} : vector<6x8x8xf32>, vector<6x8x8xf32>, vector<6x8x8xf32> -> vector<6x8x8xf32>
    "tpu.trace_stop"() : () -> ()
    %cst_20 = arith.constant 0.353553385 : f32
    %80 = vector.broadcast %cst_20 : f32 to vector<6x8x8xf32>
    %81 = arith.mulf %79, %80 : vector<6x8x8xf32>
    %cst_21 = arith.constant dense<0xFF800000> : vector<6x8xf32>
    %82 = vector.multi_reduction <maximumf>, %81, %cst_21 [2] : vector<6x8x8xf32> to vector<6x8xf32>
    %83 = vector.shape_cast %82 : vector<6x8xf32> to vector<6x8x1xf32>
    %84 = vector.broadcast %83 : vector<6x8x1xf32> to vector<6x8x8xf32>
    %85 = arith.subf %81, %84 : vector<6x8x8xf32>
    %86 = math.exp %85 : vector<6x8x8xf32>
    %cst_22 = arith.constant dense<0.000000e+00> : vector<6x8xf32>
    %87 = vector.multi_reduction <add>, %86, %cst_22 [2] : vector<6x8x8xf32> to vector<6x8xf32>
    %88 = vector.shape_cast %87 : vector<6x8xf32> to vector<6x8x1xf32>
    %89 = tpu.reciprocal %88 {approx = true} : vector<6x8x1xf32> -> vector<6x8x1xf32>
    %90 = vector.broadcast %89 : vector<6x8x1xf32> to vector<6x8x8xf32>
    %91 = arith.mulf %86, %90 : vector<6x8x8xf32>
    "tpu.trace_start"() <{level = 10 : i32, message = "bqk,bkd->bqd"}> : () -> ()
    %cst_23 = arith.constant dense<0.000000e+00> : vector<6x8x8xf32>
    %92 = tpu.matmul %91, %78, %cst_23 {dimension_numbers = #tpu.dot_dimension_numbers<[2], [1], [1], [2], [0, 0, 0, 1, 1, 2], [0], [0]>} : vector<6x8x8xf32>, vector<6x8x8xf32>, vector<6x8x8xf32> -> vector<6x8x8xf32>
    "tpu.trace_stop"() : () -> ()
    %93 = vector.extract_strided_slice %7 {offsets = [0, 24], sizes = [48, 8], strides = [1, 1]} : vector<48x96xf32> to vector<48x8xf32>
    %94 = vector.shape_cast %93 : vector<48x8xf32> to vector<6x8x8xf32>
    %95 = vector.extract_strided_slice %8 {offsets = [0, 24], sizes = [6, 8], strides = [1, 1]} : vector<6x96xf32> to vector<6x8xf32>
    %96 = vector.shape_cast %95 : vector<6x8xf32> to vector<6x1x8xf32>
    %97 = vector.broadcast %96 : vector<6x1x8xf32> to vector<6x8x8xf32>
    %98 = arith.addf %94, %97 : vector<6x8x8xf32>
    %99 = vector.extract_strided_slice %7 {offsets = [0, 56], sizes = [48, 8], strides = [1, 1]} : vector<48x96xf32> to vector<48x8xf32>
    %100 = vector.shape_cast %99 : vector<48x8xf32> to vector<6x8x8xf32>
    %101 = vector.extract_strided_slice %8 {offsets = [0, 56], sizes = [6, 8], strides = [1, 1]} : vector<6x96xf32> to vector<6x8xf32>
    %102 = vector.shape_cast %101 : vector<6x8xf32> to vector<6x1x8xf32>
    %103 = vector.broadcast %102 : vector<6x1x8xf32> to vector<6x8x8xf32>
    %104 = arith.addf %100, %103 : vector<6x8x8xf32>
    %105 = vector.extract_strided_slice %7 {offsets = [0, 88], sizes = [48, 8], strides = [1, 1]} : vector<48x96xf32> to vector<48x8xf32>
    %106 = vector.shape_cast %105 : vector<48x8xf32> to vector<6x8x8xf32>
    "tpu.trace_start"() <{level = 10 : i32, message = "bqd,bkd->bqk"}> : () -> ()
    %cst_24 = arith.constant dense<0.000000e+00> : vector<6x8x8xf32>
    %107 = tpu.matmul %98, %104, %cst_24 {dimension_numbers = #tpu.dot_dimension_numbers<[2], [2], [1], [1], [0, 0, 0, 1, 1, 1], [0], [0]>} : vector<6x8x8xf32>, vector<6x8x8xf32>, vector<6x8x8xf32> -> vector<6x8x8xf32>
    "tpu.trace_stop"() : () -> ()
    %cst_25 = arith.constant 0.353553385 : f32
    %108 = vector.broadcast %cst_25 : f32 to vector<6x8x8xf32>
    %109 = arith.mulf %107, %108 : vector<6x8x8xf32>
    %cst_26 = arith.constant dense<0xFF800000> : vector<6x8xf32>
    %110 = vector.multi_reduction <maximumf>, %109, %cst_26 [2] : vector<6x8x8xf32> to vector<6x8xf32>
    %111 = vector.shape_cast %110 : vector<6x8xf32> to vector<6x8x1xf32>
    %112 = vector.broadcast %111 : vector<6x8x1xf32> to vector<6x8x8xf32>
    %113 = arith.subf %109, %112 : vector<6x8x8xf32>
    %114 = math.exp %113 : vector<6x8x8xf32>
    %cst_27 = arith.constant dense<0.000000e+00> : vector<6x8xf32>
    %115 = vector.multi_reduction <add>, %114, %cst_27 [2] : vector<6x8x8xf32> to vector<6x8xf32>
    %116 = vector.shape_cast %115 : vector<6x8xf32> to vector<6x8x1xf32>
    %117 = tpu.reciprocal %116 {approx = true} : vector<6x8x1xf32> -> vector<6x8x1xf32>
    %118 = vector.broadcast %117 : vector<6x8x1xf32> to vector<6x8x8xf32>
    %119 = arith.mulf %114, %118 : vector<6x8x8xf32>
    "tpu.trace_start"() <{level = 10 : i32, message = "bqk,bkd->bqd"}> : () -> ()
    %cst_28 = arith.constant dense<0.000000e+00> : vector<6x8x8xf32>
    %120 = tpu.matmul %119, %106, %cst_28 {dimension_numbers = #tpu.dot_dimension_numbers<[2], [1], [1], [2], [0, 0, 0, 1, 1, 2], [0], [0]>} : vector<6x8x8xf32>, vector<6x8x8xf32>, vector<6x8x8xf32> -> vector<6x8x8xf32>
    "tpu.trace_stop"() : () -> ()
    %121 = tpu.concatenate %36, %64, %92, %120 in 2 : vector<6x8x8xf32>, vector<6x8x8xf32>, vector<6x8x8xf32>, vector<6x8x8xf32> -> vector<6x8x32xf32>
    %122 = vector.shape_cast %121 : vector<6x8x32xf32> to vector<48x32xf32>
    %c0_29 = arith.constant 0 : index
    %c0_30 = arith.constant 0 : index
    %123 = vector.load %arg5[%c0_29, %c0_30] : memref<32x32xf32, #tpu.memory_space<vmem>>, vector<32x32xf32>
    %cst_31 = arith.constant dense<0.000000e+00> : vector<48x32xf32>
    %124 = tpu.matmul %122, %123, %cst_31 {dimension_numbers = #tpu.dot_dimension_numbers<[1], [0], [0], [1], [0, 0, 1, 1], [], []>} : vector<48x32xf32>, vector<32x32xf32>, vector<48x32xf32> -> vector<48x32xf32>
    %c0_32 = arith.constant 0 : index
    %c0_33 = arith.constant 0 : index
    %125 = vector.load %arg6[%c0_32, %c0_33] : memref<1x32xf32, #tpu.memory_space<vmem>>, vector<1x32xf32>
    %126 = vector.broadcast %125 : vector<1x32xf32> to vector<48x32xf32>
    %127 = arith.addf %124, %126 : vector<48x32xf32>
    %128 = arith.addf %1, %127 : vector<48x32xf32>
    %cst_34 = arith.constant dense<0.000000e+00> : vector<48xf32>
    %129 = vector.multi_reduction <add>, %128, %cst_34 [1] : vector<48x32xf32> to vector<48xf32>
    %130 = vector.shape_cast %129 : vector<48xf32> to vector<48x1xf32>
    %cst_35 = arith.constant 3.200000e+01 : f32
    %131 = vector.broadcast %cst_35 : f32 to vector<48x1xf32>
    %132 = arith.divf %130, %131 : vector<48x1xf32>
    %133 = vector.broadcast %132 : vector<48x1xf32> to vector<48x32xf32>
    %134 = arith.subf %128, %133 : vector<48x32xf32>
    %135 = arith.mulf %134, %134 : vector<48x32xf32>
    %cst_36 = arith.constant dense<0.000000e+00> : vector<48xf32>
    %136 = vector.multi_reduction <add>, %135, %cst_36 [1] : vector<48x32xf32> to vector<48xf32>
    %137 = vector.shape_cast %136 : vector<48xf32> to vector<48x1xf32>
    %cst_37 = arith.constant 3.200000e+01 : f32
    %138 = vector.broadcast %cst_37 : f32 to vector<48x1xf32>
    %139 = arith.divf %137, %138 : vector<48x1xf32>
    %140 = vector.broadcast %132 : vector<48x1xf32> to vector<48x32xf32>
    %141 = arith.subf %128, %140 : vector<48x32xf32>
    %cst_38 = arith.constant 9.99999974E-6 : f32
    %142 = vector.broadcast %cst_38 : f32 to vector<48x1xf32>
    %143 = arith.addf %139, %142 : vector<48x1xf32>
    %144 = math.rsqrt %143 : vector<48x1xf32>
    %145 = vector.broadcast %144 : vector<48x1xf32> to vector<48x32xf32>
    %146 = arith.mulf %141, %145 : vector<48x32xf32>
    %c0_39 = arith.constant 0 : index
    %c0_40 = arith.constant 0 : index
    %147 = vector.load %arg7[%c0_39, %c0_40] : memref<1x32xf32, #tpu.memory_space<vmem>>, vector<1x32xf32>
    %148 = vector.broadcast %147 : vector<1x32xf32> to vector<48x32xf32>
    %149 = arith.mulf %146, %148 : vector<48x32xf32>
    %c0_41 = arith.constant 0 : index
    %c0_42 = arith.constant 0 : index
    %150 = vector.load %arg8[%c0_41, %c0_42] : memref<1x32xf32, #tpu.memory_space<vmem>>, vector<1x32xf32>
    %151 = vector.broadcast %150 : vector<1x32xf32> to vector<48x32xf32>
    %152 = arith.addf %149, %151 : vector<48x32xf32>
    %c0_43 = arith.constant 0 : index
    %c0_44 = arith.constant 0 : index
    %153 = vector.load %arg9[%c0_43, %c0_44] : memref<32x128xf32, #tpu.memory_space<vmem>>, vector<32x128xf32>
    %cst_45 = arith.constant dense<0.000000e+00> : vector<48x128xf32>
    %154 = tpu.matmul %152, %153, %cst_45 {dimension_numbers = #tpu.dot_dimension_numbers<[1], [0], [0], [1], [0, 0, 1, 1], [], []>} : vector<48x32xf32>, vector<32x128xf32>, vector<48x128xf32> -> vector<48x128xf32>
    %c0_46 = arith.constant 0 : index
    %c0_47 = arith.constant 0 : index
    %155 = vector.load %arg10[%c0_46, %c0_47] : memref<1x128xf32, #tpu.memory_space<vmem>>, vector<1x128xf32>
    %156 = vector.broadcast %155 : vector<1x128xf32> to vector<48x128xf32>
    %157 = arith.addf %154, %156 : vector<48x128xf32>
    %cst_48 = arith.constant 5.000000e-01 : f32
    %158 = vector.broadcast %cst_48 : f32 to vector<48x128xf32>
    %159 = arith.mulf %158, %157 : vector<48x128xf32>
    %cst_49 = arith.constant 0.707106769 : f32
    %160 = vector.broadcast %cst_49 : f32 to vector<48x128xf32>
    %161 = arith.mulf %157, %160 : vector<48x128xf32>
    %162 = math.erf %161 : vector<48x128xf32>
    %cst_50 = arith.constant 1.000000e+00 : f32
    %163 = vector.broadcast %cst_50 : f32 to vector<48x128xf32>
    %164 = arith.addf %163, %162 : vector<48x128xf32>
    %165 = arith.mulf %159, %164 : vector<48x128xf32>
    %c0_51 = arith.constant 0 : index
    %c0_52 = arith.constant 0 : index
    %166 = vector.load %arg11[%c0_51, %c0_52] : memref<128x32xf32, #tpu.memory_space<vmem>>, vector<128x32xf32>
    %cst_53 = arith.constant dense<0.000000e+00> : vector<48x32xf32>
    %167 = tpu.matmul %165, %166, %cst_53 {dimension_numbers = #tpu.dot_dimension_numbers<[1], [0], [0], [1], [0, 0, 1, 1], [], []>} : vector<48x128xf32>, vector<128x32xf32>, vector<48x32xf32> -> vector<48x32xf32>
    %c0_54 = arith.constant 0 : index
    %c0_55 = arith.constant 0 : index
    %168 = vector.load %arg12[%c0_54, %c0_55] : memref<1x32xf32, #tpu.memory_space<vmem>>, vector<1x32xf32>
    %169 = vector.broadcast %168 : vector<1x32xf32> to vector<48x32xf32>
    %170 = arith.addf %167, %169 : vector<48x32xf32>
    %171 = arith.addf %128, %170 : vector<48x32xf32>
    %172 = vector.shape_cast %171 : vector<48x32xf32> to vector<6x8x32xf32>
    %c0_56 = arith.constant 0 : index
    %c0_57 = arith.constant 0 : index
    %c0_58 = arith.constant 0 : index
    %173 = vector.load %arg13[%c0_56, %c0_57, %c0_58] : memref<6x8x32xf32, #tpu.memory_space<vmem>>, vector<6x8x32xf32>
    tpu.vector_store %arg13[%c0_56, %c0_57, %c0_58], %172 {strides = array<i32>} : memref<6x8x32xf32, #tpu.memory_space<vmem>>, vector<6x8x32xf32>,
    return
  }
  func.func @transform_0(%arg0: i32) -> (i32, i32, i32) {
    %c0_i32 = arith.constant 0 : i32
    %c0_i32_0 = arith.constant 0 : i32
    %c0_i32_1 = arith.constant 0 : i32
    %c0_i32_2 = arith.constant 0 : i32
    return %c0_i32, %c0_i32_0, %c0_i32_1 : i32, i32, i32
  }
  func.func @transform_1(%arg0: i32) -> (i32, i32) {
    %c0_i32 = arith.constant 0 : i32
    %c0_i32_0 = arith.constant 0 : i32
    %c0_i32_1 = arith.constant 0 : i32
    return %c0_i32, %c0_i32_0 : i32, i32
  }
  func.func @transform_2(%arg0: i32) -> (i32, i32) {
    %c0_i32 = arith.constant 0 : i32
    %c0_i32_0 = arith.constant 0 : i32
    %c0_i32_1 = arith.constant 0 : i32
    return %c0_i32, %c0_i32_0 : i32, i32
  }
  func.func @transform_3(%arg0: i32) -> (i32, i32) {
    %c0_i32 = arith.constant 0 : i32
    %c0_i32_0 = arith.constant 0 : i32
    %c0_i32_1 = arith.constant 0 : i32
    return %c0_i32, %c0_i32_0 : i32, i32
  }
  func.func @transform_4(%arg0: i32) -> (i32, i32) {
    %c0_i32 = arith.constant 0 : i32
    %c0_i32_0 = arith.constant 0 : i32
    %c0_i32_1 = arith.constant 0 : i32
    return %c0_i32, %c0_i32_0 : i32, i32
  }
  func.func @transform_5(%arg0: i32) -> (i32, i32) {
    %c0_i32 = arith.constant 0 : i32
    %c0_i32_0 = arith.constant 0 : i32
    %c0_i32_1 = arith.constant 0 : i32
    return %c0_i32, %c0_i32_0 : i32, i32
  }
  func.func @transform_6(%arg0: i32) -> (i32, i32) {
    %c0_i32 = arith.constant 0 : i32
    %c0_i32_0 = arith.constant 0 : i32
    %c0_i32_1 = arith.constant 0 : i32
    return %c0_i32, %c0_i32_0 : i32, i32
  }
  func.func @transform_7(%arg0: i32) -> (i32, i32) {
    %c0_i32 = arith.constant 0 : i32
    %c0_i32_0 = arith.constant 0 : i32
    %c0_i32_1 = arith.constant 0 : i32
    return %c0_i32, %c0_i32_0 : i32, i32
  }
  func.func @transform_8(%arg0: i32) -> (i32, i32) {
    %c0_i32 = arith.constant 0 : i32
    %c0_i32_0 = arith.constant 0 : i32
    %c0_i32_1 = arith.constant 0 : i32
    return %c0_i32, %c0_i32_0 : i32, i32
  }
  func.func @transform_9(%arg0: i32) -> (i32, i32) {
    %c0_i32 = arith.constant 0 : i32
    %c0_i32_0 = arith.constant 0 : i32
    %c0_i32_1 = arith.constant 0 : i32
    return %c0_i32, %c0_i32_0 : i32, i32
  }
  func.func @transform_10(%arg0: i32) -> (i32, i32) {
    %c0_i32 = arith.constant 0 : i32
    %c0_i32_0 = arith.constant 0 : i32
    %c0_i32_1 = arith.constant 0 : i32
    return %c0_i32, %c0_i32_0 : i32, i32
  }
  func.func @transform_11(%arg0: i32) -> (i32, i32) {
    %c0_i32 = arith.constant 0 : i32
    %c0_i32_0 = arith.constant 0 : i32
    %c0_i32_1 = arith.constant 0 : i32
    return %c0_i32, %c0_i32_0 : i32, i32
  }
  func.func @transform_12(%arg0: i32) -> (i32, i32, i32) {
    %c0_i32 = arith.constant 0 : i32
    %c0_i32_0 = arith.constant 0 : i32
    %c0_i32_1 = arith.constant 0 : i32
    %c0_i32_2 = arith.constant 0 : i32
    return %c0_i32, %c0_i32_0, %c0_i32_1 : i32, i32, i32
  }
}

</mosaic_0001>

<bundles_post_ra>
// kernel: camera_attention_block.1
= control target key start
LH: loop header
LB: loop body
LE: loop exit
PB: predicated region body
PF: predicated region fallthrough
CT: control target
= control target key end

     0   :  { %vm57_vm0 = vcmask 261120   ;;  %s3682_s0 = inlined_call_operand.vmem [shape: f32[6,8,32], index: 0, kind: input, shape index: {}]   ;;  %s3683_s1 = inlined_call_operand.vmem [shape: f32[6,32], index: 1, kind: input, shape index: {}]   ;;  %s3684_s2 = inlined_call_operand.vmem [shape: f32[32,96], index: 2, kind: input, shape index: {}]   ;;  %s3685_s3 = inlined_call_operand.vmem [shape: f32[1,96], index: 3, kind: input, shape index: {}]   ;;  %s3686_s4 = inlined_call_operand.vmem [shape: f32[32,32], index: 4, kind: input, shape index: {}]   ;;  %s3687_s5 = inlined_call_operand.vmem [shape: f32[1,32], index: 5, kind: input, shape index: {}]   ;;  %s3688_s6 = inlined_call_operand.vmem [shape: f32[1,32], index: 6, kind: input, shape index: {}]   ;;  %s3689_s7 = inlined_call_operand.vmem [shape: f32[1,32], index: 7, kind: input, shape index: {}]   ;;  %s3690_s8 = inlined_call_operand.vmem [shape: f32[32,128], index: 8, kind: input, shape index: {}]   ;;  %s3691_s9 = inlined_call_operand.vmem [shape: f32[1,128], index: 9, kind: input, shape index: {}]   ;;  %s3692_s10 = inlined_call_operand.vmem [shape: f32[128,32], index: 10, kind: input, shape index: {}]   ;;  %s3693_s11 = inlined_call_operand.vmem [shape: f32[1,32], index: 11, kind: input, shape index: {}]   ;;  %s3694_s12 = inlined_call_operand.hbm [shape: f32[6,8,32], index: 12, kind: output, shape index: {}]  }
   0x1   :  { %v52_v0 = vld [vmem:[%s3684_s2 + $0x18] sm:$0xff]  ;;  %v51_v1 = vld [vmem:[%s3684_s2 + $0x10] sm:$0xff]  ;;  %v50_v2 = vld [vmem:[%s3684_s2 + $0x8] sm:$0xff] }
   0x2   :  { %88 = vmatpush.msra.mxu0 %v52_v0  ;;  %126 = vmatpush.msra.mxu1 %v52_v0  ;;  %v49_v3 = vld [vmem:[%s3684_s2] sm:$0xff] }
   0x3   :  { %v42_v4 = vld [vmem:[%s3682_s0] sm:$0xff] }
   0x4   :  { %89 = vmatpush.msra.mxu0 %v51_v1  ;;  %127 = vmatpush.msra.mxu1 %v51_v1  ;;  %v48_v5 = vld [vmem:[%s3683_s1] sm:$0x3f] }
   0x6   :  { %90 = vmatpush.msra.mxu0 %v50_v2  ;;  %128 = vmatpush.msra.mxu1 %v50_v2 }
   0x7   :  { %17 = vsyncpa [#allocation3], 0  ;;  %v43_v6 = vld [vmem:[%s3682_s0 + $0x8] sm:$0xff]  ;;  %v44_v7 = vld [vmem:[%s3682_s0 + $0x10] sm:$0xff]  ;;  %s2811_s25 = smov 96   ;;  %s2813_s26 = smov 120  }
   0x8   :  { %91 = vmatpush.msra.mxu0 %v49_v3  ;;  %129 = vmatpush.msra.mxu1 %v49_v3  ;;  %v45_v8 = vld [vmem:[%s3682_s0 + $0x18] sm:$0xff]  ;;  %v46_v9 = vld [vmem:[%s3682_s0 + $0x20] sm:$0xff]  ;;  %v47_v10 = vld [vmem:[%s3682_s0 + $0x28] sm:$0xff]  ;;  %s2814_s27 = smov 88   ;;  %vm161_vm1 = vcmask 64512   ;;  %s2815_s28 = smov 80  }
   0x9   :  { %2471 = vmatmul.msk.f32.vlgmr.msra.gmra.mxu0 %vm57_vm0, %v42_v4  ;;  %2477 = vmatmul.msk.f32.vlgmr.msra.gmra.mxu1 %vm57_vm0, %v48_v5  ;;  %v2651_v11 = vld [vmem:[%s3685_s3] ss:$0 sm:$0xff]  ;;  %s2812_s3 = smov 64   ;;  %s2816_s29 = smov 56   ;;  %vm1821_vm2 = vcmask 130048   ;;  %vm1828_vm3 = vcmask 195584  }
   0xa   :  { %s2817_s30 = smov 112   ;;  %s2818_s13 = smov 48  }
   0xb   :  { %s2819_s14 = smov 72   ;;  %s2820_s2 = smov 104  }
   0xc   :  { %s2821_s15 = smov 40   ;;  %s2822_s16 = smov 16  }
   0xd   :  { %s2823_s17 = smov 8   ;;  %s2824_s1 = smov 24  }
  0x11   :  { %2472 = vmatmul.msk.f32.gmra.mxu0 %vm57_vm0, %v43_v6 }
  0x19   :  { %2473 = vmatmul.msk.f32.gmra.mxu0 %vm57_vm0, %v44_v7 }
  0x21   :  { %2474 = vmatmul.msk.f32.gmra.mxu0 %vm57_vm0, %v45_v8 }
  0x29   :  { %2475 = vmatmul.msk.f32.gmra.mxu0 %vm57_vm0, %v46_v9 }
  0x31   :  { %2476 = vmatmul.msk.f32.gmra.mxu0 %vm57_vm0, %v47_v10 }
  0x86   :  { %v93_v12 = vpop.f32.mrf.mxu0  ;;  %v131_v13 = vpop.f32.mrf.mxu1 }
  0x87   :  { %v2936_v14 = vadd.f32 %v2651_v11, %v93_v12  ;;  %v140_v15 = vperm.slane %v131_v13, 0  ;;  %v135_v16 = vrot.slane %v131_v13, 1  ;;  %v137_v25 = vrot.slane %v131_v13, 3 }
  0x88   :  { %v136_v31 = vrot.slane %v131_v13, 2  ;;  %v138_v36 = vrot.slane %v131_v13, 4  ;;  %v139_v43 = vrot.slane %v131_v13, 5 }
  0x89   :  { %v2939_v17 = vadd.f32 %v140_v15, %v2936_v14  ;;  %v141_v18 = vperm.slane %v135_v16, 0  ;;  %v143_v28 = vperm.slane %v137_v25, 0 }
  0x8a   :  { %v142_v37 = vperm.slane %v136_v31, 0  ;;  %v144_v39 = vperm.slane %v138_v36, 0  ;;  %v145_v45 = vperm.slane %v139_v43, 0 }
  0x8b   :  { %159 = vrot.lane.b32.xlu0 %v2939_v17, %s2811_s25 }
  0x8e   :  { %v96_v19 = vpop.f32.mrf.mxu0 }
  0x8f   :  { %v2943_v20 = vadd.f32 %v2651_v11, %v96_v19 }
  0x91   :  { %v2946_v21 = vadd.f32 %v141_v18, %v2943_v20  ;;  %v2950_v22 = vpack.i.bf16 %v2943_v20, %v2936_v14 }
  0x93   :  { %187 = vrot.lane.b32.xlu0 %v2946_v21, %s2811_s25 }
  0x96   :  { %v99_v23 = vpop.f32.mrf.mxu0 }
  0x97   :  { %v2954_v24 = vadd.f32 %v2651_v11, %v99_v23 }
  0x99   :  { %v2621_v26 = vpack.i.bf16 %v2954_v24, %v2943_v20  ;;  %v2631_v27 = vpack.i.bf16 %v2936_v14, %v2954_v24  ;;  %v2976_v41 = vadd.f32 %v142_v37, %v2954_v24 }
  0x9e   :  { %v102_v29 = vpop.f32.mrf.mxu0 }
  0x9f   :  { %v2960_v30 = vadd.f32 %v2651_v11, %v102_v29 }
  0xa1   :  { %v2963_v32 = vadd.f32 %v143_v28, %v2960_v30  ;;  %v2606_v33 = vpack.i.bf16 %v2954_v24, %v2960_v30  ;;  %v2636_v34 = vpack.i.bf16 %v2943_v20, %v2960_v30  ;;  %v2646_v35 = vpack.i.bf16 %v2960_v30, %v2954_v24 }
  0xa3   :  { %241 = vrot.lane.b32.xlu1 %v2963_v32, %s2811_s25  ;;  %2607 = vrot.lane.b32.xlu0 %v2606_v33, %s2812_s3 }
  0xa6   :  { %v105_v38 = vpop.f32.mrf.mxu0 }
  0xa7   :  { %v2973_v40 = vadd.f32 %v2651_v11, %v105_v38 }
  0xa9   :  { %v2979_v42 = vadd.f32 %v144_v39, %v2973_v40 }
  0xab   :  { %268 = vrot.lane.b32.xlu2 %v2979_v42, %s2811_s25  ;;  %214 = vrot.lane.b32.xlu1 %v2976_v41, %s2811_s25 }
  0xac   :  { %555 = vrot.lane.b32.xlu0 %v2939_v17, %s2813_s26 }
  0xae   :  { %v108_v44 = vpop.f32.mrf.mxu0 }
  0xaf   :  { %v2987_v46 = vadd.f32 %v2651_v11, %v108_v44 }
  0xb1   :  { %v2990_v47 = vadd.f32 %v145_v45, %v2987_v46  ;;  %v2611_v48 = vpack.i.bf16 %v2987_v46, %v2973_v40 }
  0xb3   :  { %295 = vrot.lane.b32.xlu2 %v2990_v47, %s2811_s25  ;;  %2612 = vrot.lane.b32.xlu1 %v2611_v48, %s2812_s3 }
  0xb4   :  { %583 = vrot.lane.b32.xlu0 %v2946_v21, %s2813_s26 }
  0xbb   :  { %2602 = vrot.lane.b32.xlu2 %v2950_v22, %s2812_s3 }
  0xc3   :  { %557 = vrot.lane.b32.xlu2 %v2939_v17, %s2814_s27 }
  0xcb   :  { %585 = vrot.lane.b32.xlu2 %v2946_v21, %s2814_s27 }
  0xfd   :  { %v160_v49 = vpop.permute.xlu0 %159 }
  0xfe   :  { %2478 = vmatpush.xpose.msk.msra.mxu2 %vm161_vm1, %v160_v49 }
 0x101   :  { %2479 = vmatmul.msk.f32.vlgmr.msra.gmra.mxu2 %vm161_vm1, %v2939_v17 }
 0x105   :  { %v269_v50 = vpop.permute.xlu2 %268  ;;  %v188_v51 = vpop.permute.xlu0 %187 }
 0x106   :  { %2486 = vmatpush.xpose.msk.msrb.mxu1 %vm161_vm1, %v269_v50  ;;  %2480 = vmatpush.xpose.msk.msra.mxu3 %vm161_vm1, %v188_v51 }
 0x109   :  { %2487 = vmatmul.msk.f32.vlgmr.msrb.gmra.mxu1 %vm161_vm1, %v2979_v42  ;;  %2481 = vmatmul.msk.f32.vlgmr.msra.gmra.mxu3 %vm161_vm1, %v2946_v21 }
 0x10d   :  { %v296_v52 = vpop.permute.xlu2 %295 }
 0x115   :  { %v242_v53 = vpop.permute.xlu1 %241  ;;  %v2603_v54 = vpop.permute.xlu2 %2602 }
 0x116   :  { %v2605_v55 = vunpack.i.h.bf16 %v2603_v54  ;;  %v2604_v56 = vunpack.i.l.bf16 %v2603_v54  ;;  %v2608_v57 = vpop.permute.xlu0 %2607  ;;  %2484 = vmatpush.xpose.msk.msrb.mxu3 %vm161_vm1, %v242_v53 }
 0x117   :  { %v2609_v58 = vunpack.i.l.bf16 %v2608_v57  ;;  %v2610_v60 = vunpack.i.h.bf16 %v2608_v57 }
 0x118   :  { %442 = vmatpush.msra.mxu1 %v2605_v55 }
 0x119   :  { %2485 = vmatmul.msk.f32.vlgmr.msrb.gmra.mxu3 %vm161_vm1, %v2963_v32 }
 0x11a   :  { %415 = vmatpush.msra.mxu3 %v2604_v56 }
 0x11c   :  { %496 = vmatpush.msrb.mxu3 %v2609_v58 }
 0x11d   :  { %v215_v59 = vpop.permute.xlu1 %214  ;;  %v558_v43 = vpop.permute.xlu2 %557 }
 0x11e   :  { %2482 = vmatpush.xpose.msk.msrb.mxu2 %vm161_vm1, %v215_v59  ;;  %v3033_v23 = vpop.permute.xlu0 %555 }
 0x121   :  { %2483 = vmatmul.msk.f32.vlgmr.msrb.gmra.mxu2 %vm161_vm1, %v2976_v41 }
 0x122   :  { %2488 = vmatpush.xpose.msk.msra.mxu2 %vm161_vm1, %v296_v52 }
 0x125   :  { %v2613_v61 = vpop.permute.xlu1 %2612  ;;  %v586_v48 = vpop.permute.xlu2 %585 }
 0x126   :  { %469 = vmatpush.msrb.mxu2 %v2610_v60  ;;  %v2615_v62 = vunpack.i.h.bf16 %v2613_v61  ;;  %v2614_v63 = vunpack.i.l.bf16 %v2613_v61  ;;  %v3037_v25 = vpop.permute.xlu0 %583 }
 0x128   :  { %523 = vmatpush.msrb.mxu1 %v2614_v63 }
 0x129   :  { %2489 = vmatmul.msk.f32.vlgmr.msra.gmra.mxu2 %vm161_vm1, %v2990_v47 }
 0x12a   :  { %550 = vmatpush.msra.mxu2 %v2615_v62 }
 0x184   :  { %v183_v0 = vpop.f32.mrf.mxu2 }
 0x185   :  { %v321_v1 = vmul.f32 0.35355338, %v183_v0 }
 0x186   :  { %v291_v3 = vpop.f32.mrf.mxu1 }
 0x187   :  { %v327_v2 = vsel %vm161_vm1, %v321_v1, -inf  ;;  %v325_v4 = vmul.f32 0.35355338, %v291_v3 }
 0x188   :  { %328 = vmax.xlane.f32.xlu0 %v327_v2 }
 0x189   :  { %v339_v7 = vsel %vm161_vm1, %v325_v4, -inf }
 0x18c   :  { %v210_v5 = vpop.f32.mrf.mxu3 }
 0x18d   :  { %v322_v6 = vmul.f32 0.35355338, %v210_v5 }
 0x18f   :  { %v330_v8 = vsel %vm161_vm1, %v322_v6, -inf }
 0x190   :  { %340 = vmax.xlane.f32.xlu0 %v339_v7  ;;  %331 = vmax.xlane.f32.xlu1 %v330_v8 }
 0x19c   :  { %v264_v12 = vpop.f32.mrf.mxu3 }
 0x19d   :  { %v324_v13 = vmul.f32 0.35355338, %v264_v12 }
 0x19f   :  { %v336_v15 = vsel %vm161_vm1, %v324_v13, -inf }
 0x1a4   :  { %v237_v9 = vpop.f32.mrf.mxu2  ;;  %611 = vrot.lane.b32.xlu0 %v2976_v41, %s2813_s26 }
 0x1a5   :  { %v323_v10 = vmul.f32 0.35355338, %v237_v9 }
 0x1a7   :  { %v333_v11 = vsel %vm161_vm1, %v323_v10, -inf }
 0x1a8   :  { %334 = vmax.xlane.f32.xlu2 %v333_v11 }
 0x1a9   :  { %669 = vrot.lane.b32.xlu1 %v2979_v42, %s2814_s27 }
 0x1ac   :  { %v318_v16 = vpop.f32.mrf.mxu2 }
 0x1ad   :  { %v326_v18 = vmul.f32 0.35355338, %v318_v16 }
 0x1af   :  { %v342_v19 = vsel %vm161_vm1, %v326_v18, -inf }
 0x1b0   :  { %337 = vmax.xlane.f32.xlu2 %v336_v15 }
 0x1c8   :  { %613 = vrot.lane.b32.xlu2 %v2976_v41, %s2814_s27 }
 0x1d3   :  { %343 = vmax.xlane.f32.xlu1 %v342_v19 }
 0x1ec   :  { %697 = vrot.lane.b32.xlu1 %v2990_v47, %s2814_s27 }
 0x1fb   :  { %v329_v28 = vpop.xlane.xlu0 %328 }
 0x1fc   :  { %v345_v29 = vsub.f32 %v321_v1, %v329_v28 }
 0x1fe   :  { %v351_v31 = vmul.f32 1.442695, %v345_v29 }
 0x200   :  { %2657 = vpow2.f32 %v351_v31 }
 0x203   :  { %v332_v33 = vpop.xlane.xlu1 %331  ;;  %v341_v52 = vpop.xlane.xlu0 %340 }
 0x204   :  { %v346_v36 = vsub.f32 %v322_v6, %v332_v33  ;;  %v349_v56 = vsub.f32 %v325_v4, %v341_v52 }
 0x206   :  { %v2658_v37 = vpop.eup %2657  ;;  %v353_v38 = vmul.f32 1.442695, %v346_v36  ;;  %v359_v59 = vmul.f32 1.442695, %v349_v56 }
 0x207   :  { %v363_v39 = vsel %vm161_vm1, %v2658_v37, 0.0 }
 0x208   :  { %2659 = vpow2.f32 %v353_v38  ;;  %364 = vadd.xlane.f32.xlu2 %v363_v39 }
 0x20e   :  { %v2660_v44 = vpop.eup %2659 }
 0x20f   :  { %v366_v45 = vsel %vm161_vm1, %v2660_v44, 0.0 }
 0x210   :  { %367 = vadd.xlane.f32.xlu0 %v366_v45 }
 0x216   :  { %v612_v7 = vpop.permute.xlu0 %611 }
 0x21b   :  { %v335_v49 = vpop.xlane.xlu2 %334  ;;  %v670_v0 = vpop.permute.xlu1 %669 }
 0x21c   :  { %v347_v50 = vsub.f32 %v323_v10, %v335_v49 }
 0x21e   :  { %v355_v51 = vmul.f32 1.442695, %v347_v50 }
 0x220   :  { %2661 = vpow2.f32 %v355_v51  ;;  %667 = vrot.lane.b32.xlu2 %v2979_v42, %s2813_s26 }
 0x223   :  { %v338_v53 = vpop.xlane.xlu2 %337 }
 0x224   :  { %v348_v54 = vsub.f32 %v324_v13, %v338_v53 }
 0x226   :  { %v2662_v55 = vpop.eup %2661  ;;  %v357_v57 = vmul.f32 1.442695, %v348_v54 }
 0x227   :  { %v369_v58 = vsel %vm161_vm1, %v2662_v55, 0.0 }
 0x228   :  { %2663 = vpow2.f32 %v357_v57  ;;  %370 = vadd.xlane.f32.xlu0 %v369_v58  ;;  %695 = vrot.lane.b32.xlu2 %v2990_v47, %s2813_s26 }
 0x229   :  { %2665 = vpow2.f32 %v359_v59 }
 0x22b   :  { %v614_v6 = vpop.permute.xlu2 %613 }
 0x22e   :  { %v2664_v60 = vpop.eup %2663 }
 0x22f   :  { %v372_v61 = vsel %vm161_vm1, %v2664_v60, 0.0  ;;  %v2666_v62 = vpop.eup %2665 }
 0x230   :  { %373 = vadd.xlane.f32.xlu1 %v372_v61  ;;  %v375_v63 = vsel %vm161_vm1, %v2666_v62, 0.0  ;;  %v2626_v61 = vpack.i.bf16 %v2960_v30, %v2987_v46 }
 0x238   :  { %376 = vadd.xlane.f32.xlu1 %v375_v63 }
 0x23c   :  { %641 = vrot.lane.b32.xlu0 %v2963_v32, %s2814_s27 }
 0x246   :  { %v344_v1 = vpop.xlane.xlu1 %343 }
 0x247   :  { %v350_v2 = vsub.f32 %v326_v18, %v344_v1  ;;  %v2616_v1 = vpack.i.bf16 %v2973_v40, %v2936_v14 }
 0x249   :  { %v361_v3 = vmul.f32 1.442695, %v350_v2 }
 0x24b   :  { %2667 = vpow2.f32 %v361_v3 }
 0x251   :  { %v2668_v4 = vpop.eup %2667 }
 0x252   :  { %v378_v5 = vsel %vm161_vm1, %v2668_v4, 0.0 }
 0x253   :  { %379 = vadd.xlane.f32.xlu1 %v378_v5 }
 0x25e   :  { %v698_v15 = vpop.permute.xlu1 %697 }
 0x26c   :  { %639 = vrot.lane.b32.xlu1 %v2963_v32, %s2813_s26 }
 0x27b   :  { %v365_v8 = vpop.xlane.xlu2 %364 }
 0x27c   :  { %2669 = vrcp.f32 %v365_v8 }
 0x282   :  { %v2670_v9 = vpop.eup %2669 }
 0x283   :  { %v387_v10 = vmul.f32 %v2670_v9, %v2658_v37  ;;  %v368_v11 = vpop.xlane.xlu0 %367  ;;  %v668_v39 = vpop.permute.xlu2 %667 }
 0x284   :  { %2671 = vrcp.f32 %v368_v11 }
 0x285   :  { %2490 = vmatmul.msk.f32.vlgmr.msra.gmra.mxu3 %vm161_vm1, %v387_v10 }
 0x286   :  { %2496 = vmatpush.xpose.msk.msra.mxu3 %vm161_vm1, %v558_v43 }
 0x28a   :  { %v2672_v12 = vpop.eup %2671 }
 0x28b   :  { %v388_v13 = vmul.f32 %v2672_v12, %v2660_v44 }
 0x28d   :  { %2491 = vmatmul.msk.f32.vlgmr.msra.gmra.mxu1 %vm161_vm1, %v388_v13 }
 0x28e   :  { %2498 = vmatpush.xpose.msk.msra.mxu1 %vm161_vm1, %v586_v48 }
 0x29b   :  { %v371_v16 = vpop.xlane.xlu0 %370 }
 0x29c   :  { %2673 = vrcp.f32 %v371_v16 }
 0x2a2   :  { %v2674_v18 = vpop.eup %2673 }
 0x2a3   :  { %v389_v19 = vmul.f32 %v2674_v18, %v2662_v55  ;;  %v374_v28 = vpop.xlane.xlu1 %373 }
 0x2a4   :  { %2675 = vrcp.f32 %v374_v28 }
 0x2a5   :  { %2492 = vmatmul.msk.f32.vlgmr.msrb.gmra.mxu2 %vm161_vm1, %v389_v19 }
 0x2a6   :  { %2500 = vmatpush.xpose.msk.msrb.mxu2 %vm161_vm1, %v614_v6 }
 0x2aa   :  { %v2676_v29 = vpop.eup %2675 }
 0x2ab   :  { %v390_v31 = vmul.f32 %v2676_v29, %v2664_v60  ;;  %v377_v33 = vpop.xlane.xlu1 %376 }
 0x2ac   :  { %2677 = vrcp.f32 %v377_v33 }
 0x2ad   :  { %2493 = vmatmul.msk.f32.vlgmr.msrb.gmra.mxu3 %vm161_vm1, %v390_v31 }
 0x2ae   :  { %v642_v36 = vpop.permute.xlu0 %641 }
 0x2af   :  { %2502 = vmatpush.xpose.msk.msrb.mxu3 %vm161_vm1, %v642_v36 }
 0x2b2   :  { %v2678_v37 = vpop.eup %2677 }
 0x2b3   :  { %v391_v38 = vmul.f32 %v2678_v37, %v2666_v62 }
 0x2b5   :  { %2494 = vmatmul.msk.f32.vlgmr.msrb.gmra.mxu1 %vm161_vm1, %v391_v38  ;;  %2497 = vmatmul.msk.f32.vlgmr.msra.gmra.mxu3 %vm161_vm1, %v3033_v23  ;;  %v696_v23 = vpop.permute.xlu2 %695 }
 0x2b6   :  { %2504 = vmatpush.xpose.msk.msrb.mxu1 %vm161_vm1, %v670_v0 }
 0x2bd   :  { %2499 = vmatmul.msk.f32.vlgmr.msra.gmra.mxu1 %vm161_vm1, %v3037_v25 }
 0x2c5   :  { %2505 = vmatmul.msk.f32.vlgmr.msrb.gmra.mxu1 %vm161_vm1, %v668_v39 }
 0x2c6   :  { %v380_v43 = vpop.xlane.xlu1 %379 }
 0x2c7   :  { %2679 = vrcp.f32 %v380_v43 }
 0x2cd   :  { %v2680_v44 = vpop.eup %2679 }
 0x2ce   :  { %v392_v45 = vmul.f32 %v2680_v44, %v2668_v4 }
 0x2d0   :  { %2495 = vmatmul.msk.f32.vlgmr.msra.gmra.mxu2 %vm161_vm1, %v392_v45 }
 0x2d1   :  { %2506 = vmatpush.xpose.msk.msra.mxu2 %vm161_vm1, %v698_v15 }
 0x2d8   :  { %2501 = vmatmul.msk.f32.vlgmr.msrb.gmra.mxu2 %vm161_vm1, %v612_v7 }
 0x2de   :  { %v640_v48 = vpop.permute.xlu1 %639 }
 0x2df   :  { %2503 = vmatmul.msk.f32.vlgmr.msrb.gmra.mxu3 %vm161_vm1, %v640_v48 }
 0x2e0   :  { %2507 = vmatmul.msk.f32.vlgmr.msra.gmra.mxu2 %vm161_vm1, %v696_v23 }
 0x308   :  { %v3073_v25 = vpop.f32.mrf.mxu3 }
 0x30a   :  { %v3075_v49 = vpop.f32.mrf.mxu1 }
 0x330   :  { %v3077_v50 = vpop.f32.mrf.mxu3 }
 0x332   :  { %v3079_v51 = vpop.f32.mrf.mxu1 }
 0x338   :  { %v580_v52 = vpop.f32.mrf.mxu3 }
 0x339   :  { %v723_v53 = vmul.f32 0.35355338, %v580_v52 }
 0x33a   :  { %v608_v54 = vpop.f32.mrf.mxu1 }
 0x33b   :  { %v724_v55 = vmul.f32 0.35355338, %v608_v54  ;;  %v729_v56 = vsel %vm161_vm1, %v723_v53, -inf }
 0x33c   :  { %730 = vmax.xlane.f32.xlu0 %v729_v56 }
 0x33d   :  { %v732_v57 = vsel %vm161_vm1, %v724_v55, -inf }
 0x33e   :  { %733 = vmax.xlane.f32.xlu1 %v732_v57 }
 0x342   :  { %v692_v58 = vpop.f32.mrf.mxu1 }
 0x343   :  { %v727_v59 = vmul.f32 0.35355338, %v692_v58 }
 0x345   :  { %v741_v60 = vsel %vm161_vm1, %v727_v59, -inf }
 0x346   :  { %742 = vmax.xlane.f32.xlu2 %v741_v60 }
 0x350   :  { %1009 = vrot.lane.b32.xlu0 %v2976_v41, %s2815_s28 }
 0x358   :  { %2627 = vrot.lane.b32.xlu0 %v2626_v61, %s2816_s29 }
 0x35e   :  { %2622 = vrot.lane.b32.xlu2 %v2621_v26, %s2816_s29  ;;  %v3102_v26 = vpop.f32.mrf.mxu2 }
 0x360   :  { %1037 = vrot.lane.b32.xlu0 %v2963_v32, %s2815_s28 }
 0x362   :  { %v664_v62 = vpop.f32.mrf.mxu3 }
 0x363   :  { %v726_v63 = vmul.f32 0.35355338, %v664_v62 }
 0x365   :  { %v738_v0 = vsel %vm161_vm1, %v726_v63, -inf }
 0x366   :  { %1007 = vrot.lane.b32.xlu2 %v2976_v41, %s2817_s30  ;;  %739 = vmax.xlane.f32.xlu1 %v738_v0  ;;  %v3108_v2 = vpop.f32.mrf.mxu2 }
 0x368   :  { %951 = vrot.lane.b32.xlu0 %v2939_v17, %s2817_s30 }
 0x36e   :  { %953 = vrot.lane.b32.xlu2 %v2939_v17, %s2815_s28  ;;  %v636_v3 = vpop.f32.mrf.mxu2 }
 0x36f   :  { %v3110_v4 = vmul.f32 0.35355338, %v636_v3 }
 0x371   :  { %v735_v5 = vsel %vm161_vm1, %v3110_v4, -inf }
 0x376   :  { %981 = vrot.lane.b32.xlu2 %v2946_v21, %s2815_s28  ;;  %v720_v6 = vpop.f32.mrf.mxu2 }
 0x377   :  { %v3114_v7 = vmul.f32 0.35355338, %v720_v6 }
 0x379   :  { %v744_v8 = vsel %vm161_vm1, %v3114_v7, -inf }
 0x37e   :  { %1035 = vrot.lane.b32.xlu2 %v2963_v32, %s2817_s30 }
 0x37f   :  { %2617 = vrot.lane.b32.xlu1 %v2616_v1, %s2816_s29 }
 0x392   :  { %736 = vmax.xlane.f32.xlu0 %v735_v5 }
 0x3a6   :  { %979 = vrot.lane.b32.xlu0 %v2946_v21, %s2817_s30 }
 0x3a7   :  { %745 = vmax.xlane.f32.xlu2 %v744_v8 }
 0x3af   :  { %v731_v10 = vpop.xlane.xlu0 %730 }
 0x3b0   :  { %v747_v36 = vsub.f32 %v723_v53, %v731_v10 }
 0x3b1   :  { %v734_v12 = vpop.xlane.xlu1 %733 }
 0x3b2   :  { %v748_v15 = vsub.f32 %v724_v55, %v734_v12  ;;  %v753_v38 = vmul.f32 1.442695, %v747_v36 }
 0x3b4   :  { %v755_v18 = vmul.f32 1.442695, %v748_v15 }
 0x3b9   :  { %v743_v9 = vpop.xlane.xlu2 %742 }
 0x3ba   :  { %v751_v11 = vsub.f32 %v727_v59, %v743_v9 }
 0x3bc   :  { %v761_v13 = vmul.f32 1.442695, %v751_v11 }
 0x3be   :  { %2681 = vpow2.f32 %v761_v13 }
 0x3bf   :  { %2683 = vpow2.f32 %v755_v18 }
 0x3c0   :  { %2685 = vpow2.f32 %v753_v38 }
 0x3c1   :  { %v2623_v16 = vpop.permute.xlu2 %2622 }
 0x3c2   :  { %v2625_v19 = vunpack.i.h.bf16 %v2623_v16  ;;  %v3120_v28 = vpop.permute.xlu0 %1009  ;;  %v2624_v29 = vunpack.i.l.bf16 %v2623_v16 }
 0x3c4   :  { %v3122_v31 = vpop.eup %2681  ;;  %842 = vmatpush.msrb.mxu0 %v2624_v29  ;;  %868 = vmatpush.msra.mxu1 %v2625_v19 }
 0x3c5   :  { %v777_v33 = vsel %vm161_vm1, %v3122_v31, 0.0  ;;  %v2684_v45 = vpop.eup %2683 }
 0x3c6   :  { %778 = vadd.xlane.f32.xlu2 %v777_v33  ;;  %v768_v48 = vsel %vm161_vm1, %v2684_v45, 0.0  ;;  %v2686_v52 = vpop.eup %2685 }
 0x3c7   :  { %v765_v53 = vsel %vm161_vm1, %v2686_v52, 0.0 }
 0x3c9   :  { %v3126_v37 = vpop.permute.xlu2 %1007 }
 0x3ca   :  { %v2628_v39 = vpop.permute.xlu0 %2627 }
 0x3cb   :  { %v2630_v43 = vunpack.i.h.bf16 %v2628_v39  ;;  %v2629_v44 = vunpack.i.l.bf16 %v2628_v39 }
 0x3cd   :  { %894 = vmatpush.msrb.mxu2 %v2630_v43  ;;  %946 = vmatpush.msra.mxu0 %v2629_v44 }
 0x3d0   :  { %769 = vadd.xlane.f32.xlu0 %v768_v48 }
 0x3d1   :  { %v954_v23 = vpop.permute.xlu2 %953 }
 0x3d2   :  { %2514 = vmatpush.xpose.msk.msrb.mxu1 %vm161_vm1, %v954_v23  ;;  %v1038_v61 = vpop.permute.xlu0 %1037 }
 0x3d8   :  { %766 = vadd.xlane.f32.xlu0 %v765_v53 }
 0x3d9   :  { %v982_v54 = vpop.permute.xlu2 %981  ;;  %v740_v55 = vpop.xlane.xlu1 %739 }
 0x3da   :  { %2516 = vmatpush.xpose.msk.msra.mxu2 %vm161_vm1, %v982_v54  ;;  %v750_v56 = vsub.f32 %v726_v63, %v740_v55  ;;  %v952_v1 = vpop.permute.xlu0 %951 }
 0x3dc   :  { %v759_v57 = vmul.f32 1.442695, %v750_v56 }
 0x3de   :  { %1093 = vrot.lane.b32.xlu2 %v2990_v47, %s2815_s28  ;;  %2687 = vpow2.f32 %v759_v57 }
 0x3e1   :  { %v1036_v9 = vpop.permute.xlu2 %1035 }
 0x3e4   :  { %v2688_v58 = vpop.eup %2687 }
 0x3e5   :  { %v774_v59 = vsel %vm161_vm1, %v2688_v58, 0.0 }
 0x3e6   :  { %775 = vadd.xlane.f32.xlu1 %v774_v59 }
 0x3f1   :  { %v2618_v60 = vpop.permute.xlu1 %2617 }
 0x3f2   :  { %v2620_v62 = vunpack.i.h.bf16 %v2618_v60  ;;  %v2619_v0 = vunpack.i.l.bf16 %v2618_v60 }
 0x3f4   :  { %816 = vmatpush.msra.mxu3 %v2619_v0 }
 0x3f6   :  { %920 = vmatpush.msrb.mxu3 %v2620_v62 }
 0x3ff   :  { %1065 = vrot.lane.b32.xlu1 %v2979_v42, %s2815_s28 }
 0x405   :  { %v737_v63 = vpop.xlane.xlu0 %736 }
 0x406   :  { %v749_v3 = vsub.f32 %v3110_v4, %v737_v63 }
 0x408   :  { %v757_v5 = vmul.f32 1.442695, %v749_v3 }
 0x40a   :  { %2689 = vpow2.f32 %v757_v5 }
 0x410   :  { %v2690_v6 = vpop.eup %2689 }
 0x411   :  { %v771_v8 = vsel %vm161_vm1, %v2690_v6, 0.0 }
 0x412   :  { %772 = vadd.xlane.f32.xlu2 %v771_v8 }
 0x418   :  { %v980_v4 = vpop.permute.xlu0 %979 }
 0x41a   :  { %v746_v10 = vpop.xlane.xlu2 %745 }
 0x41b   :  { %v752_v11 = vsub.f32 %v3114_v7, %v746_v10 }
 0x41d   :  { %v763_v12 = vmul.f32 1.442695, %v752_v11 }
 0x41f   :  { %2691 = vpow2.f32 %v763_v12 }
 0x425   :  { %v2692_v13 = vpop.eup %2691 }
 0x426   :  { %v780_v15 = vsel %vm161_vm1, %v2692_v13, 0.0 }
 0x427   :  { %781 = vadd.xlane.f32.xlu0 %v780_v15 }
 0x42a   :  { %1091 = vrot.lane.b32.xlu2 %v2990_v47, %s2817_s30 }
 0x439   :  { %v779_v7 = vpop.xlane.xlu2 %778 }
 0x43b   :  { %1063 = vrot.lane.b32.xlu0 %v2979_v42, %s2817_s30 }
 0x441   :  { %v1094_v48 = vpop.permute.xlu2 %1093 }
 0x443   :  { %v770_v16 = vpop.xlane.xlu0 %769 }
 0x444   :  { %2693 = vrcp.f32 %v770_v16 }
 0x44a   :  { %v2694_v18 = vpop.eup %2693 }
 0x44b   :  { %v767_v19 = vpop.xlane.xlu0 %766  ;;  %v790_v29 = vmul.f32 %v2694_v18, %v2684_v45 }
 0x44c   :  { %2695 = vrcp.f32 %v767_v19 }
 0x44d   :  { %2509 = vmatmul.msk.f32.vlgmr.msrb.gmra.mxu0 %vm161_vm1, %v790_v29  ;;  %2697 = vrcp.f32 %v779_v7 }
 0x44e   :  { %2520 = vmatpush.xpose.msk.msrb.mxu0 %vm161_vm1, %v1038_v61 }
 0x452   :  { %v2696_v33 = vpop.eup %2695 }
 0x453   :  { %v789_v36 = vmul.f32 %v2696_v33, %v2686_v52  ;;  %v2698_v38 = vpop.eup %2697 }
 0x454   :  { %v793_v43 = vmul.f32 %v2698_v38, %v3122_v31 }
 0x455   :  { %2508 = vmatmul.msk.f32.vlgmr.msra.gmra.mxu3 %vm161_vm1, %v789_v36 }
 0x456   :  { %2518 = vmatpush.xpose.msk.msra.mxu3 %vm161_vm1, %v3120_v28 }
 0x459   :  { %v776_v39 = vpop.xlane.xlu1 %775 }
 0x45a   :  { %2699 = vrcp.f32 %v776_v39 }
 0x45d   :  { %2512 = vmatmul.msk.f32.vlgmr.msrb.gmra.mxu3 %vm161_vm1, %v793_v43 }
 0x460   :  { %v2700_v44 = vpop.eup %2699 }
 0x461   :  { %v792_v45 = vmul.f32 %v2700_v44, %v2688_v58 }
 0x463   :  { %2511 = vmatmul.msk.f32.vlgmr.msrb.gmra.mxu2 %vm161_vm1, %v792_v45 }
 0x464   :  { %2524 = vmatpush.xpose.msk.msrb.mxu2 %vm161_vm1, %v1094_v48 }
 0x465   :  { %2519 = vmatmul.msk.f32.vlgmr.msra.gmra.mxu3 %vm161_vm1, %v3126_v37 }
 0x46b   :  { %2517 = vmatmul.msk.f32.vlgmr.msra.gmra.mxu2 %vm161_vm1, %v980_v4 }
 0x471   :  { %v1066_v53 = vpop.permute.xlu1 %1065 }
 0x485   :  { %v773_v28 = vpop.xlane.xlu2 %772 }
 0x486   :  { %2701 = vrcp.f32 %v773_v28 }
 0x48c   :  { %v2702_v23 = vpop.eup %2701 }
 0x48d   :  { %v791_v52 = vmul.f32 %v2702_v23, %v2690_v6  ;;  %v1092_v31 = vpop.permute.xlu2 %1091 }
 0x48e   :  { %2525 = vmatmul.msk.f32.vlgmr.msrb.gmra.mxu2 %vm161_vm1, %v1092_v31 }
 0x48f   :  { %2510 = vmatmul.msk.f32.vlgmr.msra.gmra.mxu1 %vm161_vm1, %v791_v52 }
 0x490   :  { %2522 = vmatpush.xpose.msk.msra.mxu1 %vm161_vm1, %v1066_v53 }
 0x497   :  { %2515 = vmatmul.msk.f32.vlgmr.msrb.gmra.mxu1 %vm161_vm1, %v952_v1 }
 0x49a   :  { %v782_v54 = vpop.xlane.xlu0 %781 }
 0x49b   :  { %2703 = vrcp.f32 %v782_v54 }
 0x4a1   :  { %v2704_v55 = vpop.eup %2703 }
 0x4a2   :  { %v794_v37 = vmul.f32 %v2704_v55, %v2692_v13 }
 0x4a4   :  { %2513 = vmatmul.msk.f32.vlgmr.msra.gmra.mxu0 %vm161_vm1, %v794_v37 }
 0x4ac   :  { %2521 = vmatmul.msk.f32.vlgmr.msrb.gmra.mxu0 %vm161_vm1, %v1036_v9 }
 0x4ad   :  { %v1064_v56 = vpop.permute.xlu0 %1063 }
 0x4ae   :  { %2523 = vmatmul.msk.f32.vlgmr.msra.gmra.mxu1 %vm161_vm1, %v1064_v56 }
 0x4ca   :  { %v3179_v12 = vpop.f32.mrf.mxu0 }
 0x4d8   :  { %v3164_v57 = vpop.f32.mrf.mxu3 }
 0x4e0   :  { %v3166_v58 = vpop.f32.mrf.mxu3 }
 0x4e6   :  { %v3168_v59 = vpop.f32.mrf.mxu2 }
 0x4e8   :  { %v1032_v60 = vpop.f32.mrf.mxu3 }
 0x4e9   :  { %v1121_v61 = vmul.f32 0.35355338, %v1032_v60 }
 0x4eb   :  { %v1131_v62 = vsel %vm161_vm1, %v1121_v61, -inf }
 0x4ec   :  { %1132 = vmax.xlane.f32.xlu0 %v1131_v62 }
 0x4ee   :  { %v1004_v0 = vpop.f32.mrf.mxu2 }
 0x4ef   :  { %v1120_v1 = vmul.f32 0.35355338, %v1004_v0 }
 0x4f1   :  { %v1128_v63 = vsel %vm161_vm1, %v1120_v1, -inf }
 0x4f4   :  { %1129 = vmax.xlane.f32.xlu0 %v1128_v63 }
 0x50c   :  { %v3172_v3 = vpop.f32.mrf.mxu1 }
 0x511   :  { %v1116_v5 = vpop.f32.mrf.mxu2 }
 0x512   :  { %v3174_v6 = vmul.f32 0.35355338, %v1116_v5 }
 0x514   :  { %v976_v8 = vpop.f32.mrf.mxu1  ;;  %v1140_v9 = vsel %vm161_vm1, %v3174_v6, -inf }
 0x515   :  { %v1119_v10 = vmul.f32 0.35355338, %v976_v8  ;;  %1141 = vmax.xlane.f32.xlu0 %v1140_v9 }
 0x517   :  { %v1125_v11 = vsel %vm161_vm1, %v1119_v10, -inf }
 0x518   :  { %1126 = vmax.xlane.f32.xlu2 %v1125_v11 }
 0x521   :  { %v3181_v13 = vpop.f32.mrf.mxu0 }
 0x529   :  { %v1060_v15 = vpop.f32.mrf.mxu0  ;;  %2637 = vrot.lane.b32.xlu0 %v2636_v34, %s2818_s13 }
 0x52a   :  { %v1122_v4 = vmul.f32 0.35355338, %v1060_v15 }
 0x52b   :  { %v1088_v18 = vpop.f32.mrf.mxu1 }
 0x52c   :  { %v1134_v16 = vsel %vm161_vm1, %v1122_v4, -inf  ;;  %v1123_v19 = vmul.f32 0.35355338, %v1088_v18 }
 0x52d   :  { %1135 = vmax.xlane.f32.xlu1 %v1134_v16 }
 0x52e   :  { %v1137_v29 = vsel %vm161_vm1, %v1123_v19, -inf }
 0x530   :  { %1349 = vrot.lane.b32.xlu2 %v2939_v17, %s2819_s14 }
 0x546   :  { %2632 = vrot.lane.b32.xlu1 %v2631_v27, %s2818_s13 }
 0x559   :  { %1138 = vmax.xlane.f32.xlu2 %v1137_v29 }
 0x55f   :  { %v1133_v20 = vpop.xlane.xlu0 %1132 }
 0x560   :  { %v1145_v34 = vsub.f32 %v1121_v61, %v1133_v20 }
 0x562   :  { %v1153_v7 = vmul.f32 1.442695, %v1145_v34 }
 0x564   :  { %2705 = vpow2.f32 %v1153_v7 }
 0x567   :  { %v1130_v33 = vpop.xlane.xlu0 %1129 }
 0x568   :  { %v1144_v36 = vsub.f32 %v1120_v1, %v1130_v33 }
 0x56a   :  { %v1151_v38 = vmul.f32 1.442695, %v1144_v36  ;;  %v3195_v39 = vpop.eup %2705 }
 0x56b   :  { %v1167_v43 = vsel %vm161_vm1, %v3195_v39, 0.0 }
 0x56c   :  { %2707 = vpow2.f32 %v1151_v38 }
 0x570   :  { %1168 = vadd.xlane.f32.xlu1 %v1167_v43 }
 0x572   :  { %v3199_v14 = vpop.eup %2707 }
 0x573   :  { %v1164_v27 = vsel %vm161_vm1, %v3199_v14, 0.0 }
 0x574   :  { %1165 = vadd.xlane.f32.xlu0 %v1164_v27 }
 0x588   :  { %1375 = vrot.lane.b32.xlu0 %v2946_v21, %s2820_s2  ;;  %v1142_v28 = vpop.xlane.xlu0 %1141 }
 0x589   :  { %1377 = vrot.lane.b32.xlu1 %v2946_v21, %s2819_s14 }
 0x58b   :  { %v1127_v44 = vpop.xlane.xlu2 %1126 }
 0x58c   :  { %v1143_v45 = vsub.f32 %v1119_v10, %v1127_v44 }
 0x58e   :  { %v1149_v48 = vmul.f32 1.442695, %v1143_v45 }
 0x590   :  { %2709 = vpow2.f32 %v1149_v48  ;;  %1321 = vrot.lane.b32.xlu0 %v2987_v46, %s2818_s13 }
 0x591   :  { %1295 = vrot.lane.b32.xlu1 %v2973_v40, %s2818_s13 }
 0x593   :  { %v1350_v61 = vpop.permute.xlu2 %1349 }
 0x596   :  { %v3210_v23 = vpop.eup %2709 }
 0x597   :  { %v1161_v52 = vsel %vm161_vm1, %v3210_v23, 0.0 }
 0x598   :  { %1162 = vadd.xlane.f32.xlu2 %v1161_v52  ;;  %1433 = vrot.lane.b32.xlu0 %v2963_v32, %s2819_s14 }
 0x599   :  { %1405 = vrot.lane.b32.xlu1 %v2976_v41, %s2819_s14 }
 0x59b   :  { %v2638_v21 = vpop.permute.xlu0 %2637 }
 0x59c   :  { %v2640_v31 = vunpack.i.h.bf16 %v2638_v21  ;;  %v2639_v53 = vunpack.i.l.bf16 %v2638_v21 }
 0x59e   :  { %1238 = vmatpush.msra.mxu0 %v2640_v31  ;;  %1290 = vmatpush.msra.mxu2 %v2639_v53 }
 0x5a0   :  { %1461 = vrot.lane.b32.xlu0 %v2979_v42, %s2819_s14  ;;  %v1136_v54 = vpop.xlane.xlu1 %1135 }
 0x5a1   :  { %1403 = vrot.lane.b32.xlu1 %v2976_v41, %s2820_s2  ;;  %v1146_v55 = vsub.f32 %v1122_v4, %v1136_v54 }
 0x5a3   :  { %v1155_v62 = vmul.f32 1.442695, %v1146_v55 }
 0x5a5   :  { %2711 = vpow2.f32 %v1155_v62 }
 0x5a9   :  { %1431 = vrot.lane.b32.xlu1 %v2963_v32, %s2820_s2  ;;  %v1148_v32 = vsub.f32 %v3174_v6, %v1142_v28 }
 0x5ab   :  { %v2712_v41 = vpop.eup %2711 }
 0x5b0   :  { %1347 = vrot.lane.b32.xlu2 %v2939_v17, %s2820_s2  ;;  %v1170_v17 = vsel %vm161_vm1, %v2712_v41, 0.0 }
 0x5b1   :  { %1459 = vrot.lane.b32.xlu1 %v2979_v42, %s2820_s2  ;;  %v1159_v42 = vmul.f32 1.442695, %v1148_v32 }
 0x5b3   :  { %2713 = vpow2.f32 %v1159_v42 }
 0x5b8   :  { %v2633_v37 = vpop.permute.xlu1 %2632 }
 0x5b9   :  { %v2635_v56 = vunpack.i.h.bf16 %v2633_v37  ;;  %v2634_v60 = vunpack.i.l.bf16 %v2633_v37  ;;  %1487 = vrot.lane.b32.xlu1 %v2990_v47, %s2820_s2  ;;  %v2714_v5 = vpop.eup %2713  ;;  %s2826_s2 = smov [#allocation2]  }
 0x5ba   :  { %v1176_v10 = vsel %vm161_vm1, %v2714_v5, 0.0 }
 0x5bb   :  { %1212 = vmatpush.msrb.mxu3 %v2635_v56  ;;  %1264 = vmatpush.msrb.mxu1 %v2634_v60 }
 0x5bd   :  { %2532 = vmatpush.xpose.msk.msra.mxu1 %vm161_vm1, %v1350_v61 }
 0x5ca   :  { %1171 = vadd.xlane.f32.xlu0 %v1170_v17 }
 0x5cc   :  { %v1139_v0 = vpop.xlane.xlu2 %1138 }
 0x5cd   :  { %v1147_v1 = vsub.f32 %v1123_v19, %v1139_v0 }
 0x5cf   :  { %v1157_v63 = vmul.f32 1.442695, %v1147_v1 }
 0x5d1   :  { %2715 = vpow2.f32 %v1157_v63 }
 0x5d7   :  { %v2716_v8 = vpop.eup %2715 }
 0x5d8   :  { %v1173_v9 = vsel %vm161_vm1, %v2716_v8, 0.0 }
 0x5d9   :  { %1174 = vadd.xlane.f32.xlu0 %v1173_v9  ;;  %1177 = vadd.xlane.f32.xlu2 %v1176_v10 }
 0x5e3   :  { %v1169_v11 = vpop.xlane.xlu1 %1168 }
 0x5e4   :  { %2717 = vrcp.f32 %v1169_v11 }
 0x5e7   :  { %v1166_v6 = vpop.xlane.xlu0 %1165 }
 0x5e8   :  { %2719 = vrcp.f32 %v1166_v6 }
 0x5ea   :  { %v2718_v15 = vpop.eup %2717 }
 0x5eb   :  { %v1187_v4 = vmul.f32 %v2718_v15, %v3195_v39 }
 0x5ed   :  { %2528 = vmatmul.msk.f32.vlgmr.msrb.gmra.mxu1 %vm161_vm1, %v1187_v4  ;;  %1489 = vrot.lane.b32.xlu0 %v2990_v47, %s2819_s14  ;;  %s2459_s14 = sshll.u32 %s3694_s12, 4  ;;  %s2460_s14 = int_to_ptr.hbm [resolvable:$true] %s2459_s14 }
 0x5ee   :  { %v2720_v16 = vpop.eup %2719 }
 0x5ef   :  { %v1186_v18 = vmul.f32 %v2720_v16, %v3199_v14 }
 0x5f1   :  { %2527 = vmatmul.msk.f32.vlgmr.msra.gmra.mxu0 %vm161_vm1, %v1186_v18 }
 0x5fa   :  { %v1376_v19 = vpop.permute.xlu0 %1375 }
 0x5fb   :  { %v1378_v29 = vpop.permute.xlu1 %1377 }
 0x5fc   :  { %2534 = vmatpush.xpose.msk.msrb.mxu2 %vm161_vm1, %v1378_v29 }
 0x602   :  { %v1322_v20 = vpop.permute.xlu0 %1321 }
 0x603   :  { %v1296_v34 = vpop.permute.xlu1 %1295  ;;  %1342 = vmatpush.msrb.mxu0 %v1322_v20 }
 0x604   :  { %1316 = vmatpush.msra.mxu3 %v1296_v34 }
 0x60a   :  { %v1434_v7 = vpop.permute.xlu0 %1433 }
 0x60b   :  { %v1163_v33 = vpop.xlane.xlu2 %1162  ;;  %v1406_v36 = vpop.permute.xlu1 %1405  ;;  %2538 = vmatpush.xpose.msk.msra.mxu0 %vm161_vm1, %v1434_v7 }
 0x60c   :  { %2721 = vrcp.f32 %v1163_v33 }
 0x612   :  { %v2722_v47 = vpop.eup %2721  ;;  %v1462_v38 = vpop.permute.xlu0 %1461 }
 0x613   :  { %v1185_v39 = vmul.f32 %v2722_v47, %v3210_v23  ;;  %v1348_v43 = vpop.permute.xlu2 %1347  ;;  %v1404_v14 = vpop.permute.xlu1 %1403  ;;  %2540 = vmatpush.xpose.msk.msrb.mxu1 %vm161_vm1, %v1462_v38 }
 0x614   :  { %2533 = vmatmul.msk.f32.vlgmr.msra.gmra.mxu1 %vm161_vm1, %v1348_v43 }
 0x615   :  { %2526 = vmatmul.msk.f32.vlgmr.msrb.gmra.mxu3 %vm161_vm1, %v1185_v39 }
 0x616   :  { %2536 = vmatpush.xpose.msk.msrb.mxu3 %vm161_vm1, %v1406_v36 }
 0x61b   :  { %v1432_v27 = vpop.permute.xlu1 %1431 }
 0x623   :  { %v1460_v44 = vpop.permute.xlu1 %1459 }
 0x624   :  { %2541 = vmatmul.msk.f32.vlgmr.msrb.gmra.mxu1 %vm161_vm1, %v1460_v44 }
 0x62b   :  { %v1488_v37 = vpop.permute.xlu1 %1487 }
 0x63d   :  { %v1172_v45 = vpop.xlane.xlu0 %1171 }
 0x63e   :  { %2723 = vrcp.f32 %v1172_v45 }
 0x644   :  { %v2724_v48 = vpop.eup %2723 }
 0x645   :  { %v1188_v28 = vmul.f32 %v2724_v48, %v2712_v41 }
 0x647   :  { %2529 = vmatmul.msk.f32.vlgmr.msra.gmra.mxu2 %vm161_vm1, %v1188_v28 }
 0x64c   :  { %v1178_v23 = vpop.xlane.xlu2 %1177  ;;  %v1175_v52 = vpop.xlane.xlu0 %1174 }
 0x64d   :  { %2725 = vrcp.f32 %v1178_v23 }
 0x64e   :  { %2727 = vrcp.f32 %v1175_v52 }
 0x64f   :  { %2535 = vmatmul.msk.f32.vlgmr.msrb.gmra.mxu2 %vm161_vm1, %v1376_v19 }
 0x653   :  { %v2726_v21 = vpop.eup %2725 }
 0x654   :  { %v2728_v31 = vpop.eup %2727  ;;  %v1190_v53 = vmul.f32 %v2726_v21, %v2714_v5 }
 0x655   :  { %v1189_v54 = vmul.f32 %v2728_v31, %v2716_v8 }
 0x656   :  { %2531 = vmatmul.msk.f32.vlgmr.msrb.gmra.mxu0 %vm161_vm1, %v1190_v53 }
 0x657   :  { %2530 = vmatmul.msk.f32.vlgmr.msra.gmra.mxu3 %vm161_vm1, %v1189_v54 }
 0x65e   :  { %2539 = vmatmul.msk.f32.vlgmr.msra.gmra.mxu0 %vm161_vm1, %v1432_v27 }
 0x65f   :  { %2537 = vmatmul.msk.f32.vlgmr.msrb.gmra.mxu3 %vm161_vm1, %v1404_v14  ;;  %v1490_v55 = vpop.permute.xlu0 %1489 }
 0x660   :  { %2542 = vmatpush.xpose.msk.msra.mxu2 %vm161_vm1, %v1490_v55 }
 0x663   :  { %2543 = vmatmul.msk.f32.vlgmr.msra.gmra.mxu2 %vm161_vm1, %v1488_v37 }
 0x66a   :  { %v3252_v56 = vpop.f32.mrf.mxu1 }
 0x66e   :  { %v3257_v32 = vpop.f32.mrf.mxu0 }
 0x691   :  { %v1372_v60 = vpop.f32.mrf.mxu1 }
 0x692   :  { %v1515_v61 = vmul.f32 0.35355338, %v1372_v60 }
 0x694   :  { %v1521_v62 = vsel %vm161_vm1, %v1515_v61, -inf }
 0x695   :  { %1522 = vmax.xlane.f32.xlu2 %v1521_v62 }
 0x698   :  { %v1214_v17 = vpop.f32.mrf.mxu3 }
 0x6a1   :  { %v1484_v11 = vpop.f32.mrf.mxu1 }
 0x6a2   :  { %v1519_v6 = vmul.f32 0.35355338, %v1484_v11 }
 0x6a4   :  { %v1533_v18 = vsel %vm161_vm1, %v1519_v6, -inf }
 0x6ca   :  { %v3255_v41 = vpop.f32.mrf.mxu2 }
 0x6d2   :  { %v1400_v42 = vpop.f32.mrf.mxu2 }
 0x6d3   :  { %v1516_v0 = vmul.f32 0.35355338, %v1400_v42  ;;  %v3259_v1 = vpop.f32.mrf.mxu0 }
 0x6d5   :  { %v1524_v63 = vsel %vm161_vm1, %v1516_v0, -inf }
 0x6d6   :  { %1525 = vmax.xlane.f32.xlu0 %v1524_v63 }
 0x6da   :  { %v3262_v5 = vpop.f32.mrf.mxu3 }
 0x6db   :  { %v1456_v8 = vpop.f32.mrf.mxu0 }
 0x6dc   :  { %v1518_v9 = vmul.f32 0.35355338, %v1456_v8 }
 0x6de   :  { %v1530_v10 = vsel %vm161_vm1, %v1518_v9, -inf }
 0x6df   :  { %1531 = vmax.xlane.f32.xlu2 %v1530_v10 }
 0x6e2   :  { %v1428_v15 = vpop.f32.mrf.mxu3 }
 0x6e3   :  { %v1517_v4 = vmul.f32 0.35355338, %v1428_v15 }
 0x6e5   :  { %v1527_v16 = vsel %vm161_vm1, %v1517_v4, -inf }
 0x6e6   :  { %1528 = vmax.xlane.f32.xlu1 %v1527_v16  ;;  %v1512_v20 = vpop.f32.mrf.mxu2 }
 0x6e7   :  { %1534 = vmax.xlane.f32.xlu2 %v1533_v18  ;;  %v1520_v7 = vmul.f32 0.35355338, %v1512_v20 }
 0x6e9   :  { %v1536_v33 = vsel %vm161_vm1, %v1520_v7, -inf }
 0x6ff   :  { %2642 = vrot.lane.b32.xlu2 %v2950_v22, %s2821_s15 }
 0x708   :  { %v1523_v19 = vpop.xlane.xlu2 %1522 }
 0x709   :  { %v1539_v29 = vsub.f32 %v1515_v61, %v1523_v19 }
 0x70b   :  { %v1545_v34 = vmul.f32 1.442695, %v1539_v29 }
 0x70d   :  { %2729 = vpow2.f32 %v1545_v34 }
 0x713   :  { %v2730_v36 = vpop.eup %2729 }
 0x714   :  { %v1557_v47 = vsel %vm161_vm1, %v2730_v36, 0.0 }
 0x728   :  { %1537 = vmax.xlane.f32.xlu2 %v1536_v33 }
 0x730   :  { %1558 = vadd.xlane.f32.xlu2 %v1557_v47 }
 0x748   :  { %1691 = vrot.lane.b32.xlu2 %v2973_v40, %s2821_s15 }
 0x749   :  { %v1526_v38 = vpop.xlane.xlu0 %1525 }
 0x74a   :  { %v1540_v39 = vsub.f32 %v1516_v0, %v1526_v38  ;;  %v1838_v38 = vld [vmem:[%s3686_s4 + $0x18] sm:$0xff] }
 0x74c   :  { %v1547_v43 = vmul.f32 1.442695, %v1540_v39  ;;  %v1835_v39 = vld [vmem:[%s3686_s4] sm:$0xff] }
 0x74e   :  { %2731 = vpow2.f32 %v1547_v43 }
 0x750   :  { %1717 = vrot.lane.b32.xlu2 %v2987_v46, %s2821_s15 }
 0x752   :  { %v1532_v22 = vpop.xlane.xlu2 %1531 }
 0x753   :  { %v1542_v14 = vsub.f32 %v1518_v9, %v1532_v22 }
 0x754   :  { %v2732_v27 = vpop.eup %2731 }
 0x755   :  { %v1551_v44 = vmul.f32 1.442695, %v1542_v14  ;;  %v1560_v45 = vsel %vm161_vm1, %v2732_v27, 0.0 }
 0x756   :  { %1561 = vadd.xlane.f32.xlu0 %v1560_v45 }
 0x757   :  { %2733 = vpow2.f32 %v1551_v44 }
 0x758   :  { %1773 = vrot.lane.b32.xlu2 %v1214_v17, %s2822_s16 }
 0x759   :  { %v1529_v48 = vpop.xlane.xlu1 %1528 }
 0x75a   :  { %v1541_v40 = vsub.f32 %v1517_v4, %v1529_v48  ;;  %v1535_v28 = vpop.xlane.xlu2 %1534 }
 0x75b   :  { %v1543_v23 = vsub.f32 %v1519_v6, %v1535_v28 }
 0x75c   :  { %v1549_v52 = vmul.f32 1.442695, %v1541_v40 }
 0x75d   :  { %v2734_v21 = vpop.eup %2733  ;;  %v1553_v31 = vmul.f32 1.442695, %v1543_v23 }
 0x75e   :  { %2735 = vpow2.f32 %v1549_v52  ;;  %v1566_v46 = vsel %vm161_vm1, %v2734_v21, 0.0 }
 0x75f   :  { %2737 = vpow2.f32 %v1553_v31  ;;  %1567 = vadd.xlane.f32.xlu0 %v1566_v46 }
 0x760   :  { %1751 = vrot.lane.b32.xlu2 %v3179_v12, %s2823_s17 }
 0x762   :  { %v2643_v53 = vpop.permute.xlu2 %2642 }
 0x763   :  { %v2645_v54 = vunpack.i.h.bf16 %v2643_v53  ;;  %v2644_v55 = vunpack.i.l.bf16 %v2643_v53 }
 0x764   :  { %v2736_v37 = vpop.eup %2735 }
 0x765   :  { %v2738_v60 = vpop.eup %2737  ;;  %v1563_v61 = vsel %vm161_vm1, %v2736_v37, 0.0  ;;  %1608 = vmatpush.msra.mxu3 %v2644_v55  ;;  %1634 = vmatpush.msrb.mxu0 %v2645_v54 }
 0x766   :  { %1564 = vadd.xlane.f32.xlu1 %v1563_v61  ;;  %v1569_v62 = vsel %vm161_vm1, %v2738_v60, 0.0 }
 0x767   :  { %1570 = vadd.xlane.f32.xlu0 %v1569_v62 }
 0x77f   :  { %2647 = vrot.lane.b32.xlu1 %v2646_v35, %s2821_s15  ;;  %s2457_s15 = sshll.u32 %s2826_s2, 4  ;;  %s2458_s15 = int_to_ptr.vmem [resolvable:$true] %s2457_s15 }
 0x79b   :  { %v1538_v17 = vpop.xlane.xlu2 %1537 }
 0x79c   :  { %v1544_v12 = vsub.f32 %v1520_v7, %v1538_v17 }
 0x79e   :  { %v1555_v42 = vmul.f32 1.442695, %v1544_v12 }
 0x7a0   :  { %2739 = vpow2.f32 %v1555_v42 }
 0x7a3   :  { %v1559_v0 = vpop.xlane.xlu2 %1558 }
 0x7a4   :  { %2741 = vrcp.f32 %v1559_v0 }
 0x7a6   :  { %v2740_v63 = vpop.eup %2739 }
 0x7a7   :  { %v1572_v8 = vsel %vm161_vm1, %v2740_v63, 0.0 }
 0x7a8   :  { %1573 = vadd.xlane.f32.xlu0 %v1572_v8 }
 0x7aa   :  { %v2742_v9 = vpop.eup %2741 }
 0x7ab   :  { %v1581_v10 = vmul.f32 %v2742_v9, %v2730_v36  ;;  %v1692_v11 = vpop.permute.xlu2 %1691 }
 0x7ac   :  { %1712 = vmatpush.msrb.mxu3 %v1692_v11 }
 0x7ad   :  { %2544 = vmatmul.msk.f32.vlgmr.msra.gmra.mxu3 %vm161_vm1, %v1581_v10 }
 0x7b3   :  { %v1718_v6 = vpop.permute.xlu2 %1717 }
 0x7b4   :  { %1738 = vmatpush.msra.mxu0 %v1718_v6 }
 0x7bb   :  { %v1774_v43 = vpop.permute.xlu2 %1773 }
 0x7bc   :  { %1749 = vrot.lane.b32.xlu0 %v3164_v57, %s2823_s17 }
 0x7c3   :  { %v1752_v44 = vpop.permute.xlu2 %1751 }
 0x7c4   :  { %1777 = vrot.lane.b32.xlu0 %v3252_v56, %s2822_s16  ;;  %v1816_v28 = vsel %vm161_vm1, %v3075_v49, %v1752_v44 }
 0x7c9   :  { %v1562_v24 = vpop.xlane.xlu0 %1561 }
 0x7ca   :  { %2743 = vrcp.f32 %v1562_v24 }
 0x7cc   :  { %1779 = vrot.lane.b32.xlu0 %v3255_v41, %s2822_s16 }
 0x7d0   :  { %v2744_v30 = vpop.eup %2743 }
 0x7d1   :  { %v1582_v35 = vmul.f32 %v2744_v30, %v2732_v27 }
 0x7d2   :  { %v1568_v15 = vpop.xlane.xlu0 %1567 }
 0x7d3   :  { %2545 = vmatmul.msk.f32.vlgmr.msrb.gmra.mxu0 %vm161_vm1, %v1582_v35 }
 0x7d4   :  { %1781 = vrot.lane.b32.xlu0 %v3262_v5, %s2822_s16 }
 0x7d9   :  { %v1565_v16 = vpop.xlane.xlu1 %1564 }
 0x7da   :  { %v1571_v4 = vpop.xlane.xlu0 %1570 }
 0x7db   :  { %2745 = vrcp.f32 %v1571_v4  ;;  %v2779_v4 = vld [vmem:[%s3682_s0] sm:$0xff] }
 0x7dc   :  { %1783 = vrot.lane.b32.xlu0 %v3259_v1, %s2822_s16  ;;  %2747 = vrcp.f32 %v1568_v15 }
 0x7dd   :  { %2749 = vrcp.f32 %v1565_v16 }
 0x7e1   :  { %v2746_v57 = vpop.eup %2745 }
 0x7e2   :  { %v1585_v56 = vmul.f32 %v2746_v57, %v2738_v60  ;;  %v2748_v41 = vpop.eup %2747 }
 0x7e3   :  { %v2750_v18 = vpop.eup %2749  ;;  %v1584_v34 = vmul.f32 %v2748_v41, %v2734_v21  ;;  %v2780_v41 = vld [vmem:[%s3682_s0 + $0x8] sm:$0xff] }
 0x7e4   :  { %2548 = vmatmul.msk.f32.vlgmr.msrb.gmra.mxu3 %vm161_vm1, %v1585_v56  ;;  %v1583_v7 = vmul.f32 %v2750_v18, %v2736_v37 }
 0x7f1   :  { %v2648_v19 = vpop.permute.xlu1 %2647 }
 0x7f2   :  { %v2650_v29 = vunpack.i.h.bf16 %v2648_v19  ;;  %v2649_v20 = vunpack.i.l.bf16 %v2648_v19 }
 0x7f4   :  { %1660 = vmatpush.msra.mxu1 %v2649_v20  ;;  %1686 = vmatpush.msrb.mxu2 %v2650_v29 }
 0x7f5   :  { %2546 = vmatmul.msk.f32.vlgmr.msra.gmra.mxu1 %vm161_vm1, %v1583_v7  ;;  %2547 = vmatmul.msk.f32.vlgmr.msrb.gmra.mxu2 %vm161_vm1, %v1584_v34  ;;  %v2781_v34 = vld [vmem:[%s3682_s0 + $0x10] sm:$0xff] }
 0x7f6   :  { %1873 = vmatpush.msrb.mxu1 %v1838_v38 }
 0x81b   :  { %v1574_v1 = vpop.xlane.xlu0 %1573 }
 0x81c   :  { %2751 = vrcp.f32 %v1574_v1 }
 0x822   :  { %v2752_v5 = vpop.eup %2751 }
 0x823   :  { %v1586_v33 = vmul.f32 %v2752_v5, %v2740_v63 }
 0x825   :  { %2549 = vmatmul.msk.f32.vlgmr.msra.gmra.mxu0 %vm161_vm1, %v1586_v33 }
 0x82e   :  { %v1750_v22 = vpop.permute.xlu0 %1749 }
 0x82f   :  { %v1815_v14 = vsel %vm161_vm1, %v3073_v25, %v1750_v22  ;;  %v2784_v22 = vld [vmem:[%s3682_s0 + $0x28] sm:$0xff] }
 0x830   :  { %v1610_v36 = vpop.f32.mrf.mxu3  ;;  %v1822_v48 = vsel %vm1821_vm2, %v1815_v14, %v1774_v43 }
 0x831   :  { %1797 = vrot.lane.b32.xlu1 %v1610_v36, %s2824_s1  ;;  %v2782_v36 = vld [vmem:[%s3682_s0 + $0x18] sm:$0xff] }
 0x836   :  { %v1778_v46 = vpop.permute.xlu0 %1777 }
 0x839   :  { %1775 = vrot.lane.b32.xlu1 %v3257_v32, %s2822_s16 }
 0x83e   :  { %v1780_v49 = vpop.permute.xlu0 %1779 }
 0x841   :  { %1753 = vrot.lane.b32.xlu1 %v3172_v3, %s2823_s17  ;;  %v1837_v3 = vld [vmem:[%s3686_s4 + $0x10] sm:$0xff] }
 0x842   :  { %1874 = vmatpush.msrb.mxu1 %v1837_v3 }
 0x846   :  { %v1782_v0 = vpop.permute.xlu0 %1781 }
 0x849   :  { %1755 = vrot.lane.b32.xlu1 %v3168_v59, %s2823_s17 }
 0x84e   :  { %v1784_v11 = vpop.permute.xlu0 %1783 }
 0x850   :  { %v1636_v47 = vpop.f32.mrf.mxu0 }
 0x851   :  { %1799 = vrot.lane.b32.xlu2 %v1636_v47, %s2824_s1  ;;  %1757 = vrot.lane.b32.xlu1 %v3166_v58, %s2823_s17 }
 0x859   :  { %1759 = vrot.lane.b32.xlu1 %v3181_v13, %s2823_s17  ;;  %v1836_v13 = vld [vmem:[%s3686_s4 + $0x8] sm:$0xff] }
 0x85a   :  { %1875 = vmatpush.msrb.mxu1 %v1836_v13 }
 0x85c   :  { %1876 = vmatpush.msrb.mxu1 %v1835_v39 }
 0x867   :  { %v1714_v58 = vpop.f32.mrf.mxu3 }
 0x872   :  { %v1662_v59 = vpop.f32.mrf.mxu1 }
 0x873   :  { %1801 = vrot.lane.b32.xlu2 %v1662_v59, %s2824_s1 }
 0x878   :  { %v1688_v32 = vpop.f32.mrf.mxu2 }
 0x87b   :  { %1803 = vrot.lane.b32.xlu2 %v1688_v32, %s2824_s1  ;;  %v2783_v32 = vld [vmem:[%s3682_s0 + $0x20] sm:$0xff] }
 0x883   :  { %1805 = vrot.lane.b32.xlu2 %v1714_v58, %s2824_s1 }
 0x8a2   :  { %v1740_v27 = vpop.f32.mrf.mxu0 }
 0x8a3   :  { %v1798_v45 = vpop.permute.xlu1 %1797  ;;  %1807 = vrot.lane.b32.xlu2 %v1740_v27, %s2824_s1  ;;  %v2825_v27 = vmov 32.0  }
 0x8a4   :  { %v1829_v40 = vsel %vm1828_vm3, %v1822_v48, %v1798_v45  ;;  %2753 = vrcp.f32 %v2825_v27 }
 0x8a5   :  { %2550 = vmatmul.msk.f32.vlgmr.msrb.gmra.mxu1 %vm57_vm0, %v1829_v40 }
 0x8aa   :  { %v2754_v45 = vpop.eup %2753 }
 0x8ab   :  { %v1776_v23 = vpop.permute.xlu1 %1775  ;;  %v1800_v52 = vpop.permute.xlu2 %1799  ;;  %v1921_v48 = vmul.f32 32.0, %v2754_v45  ;;  %vm1925_vm4 = vweird.f32 %v2754_v45 }
 0x8ac   :  { %v1823_v25 = vsel %vm1821_vm2, %v1816_v28, %v1776_v23 }
 0x8ad   :  { %v1830_v21 = vsel %vm1828_vm3, %v1823_v25, %v1800_v52  ;;  %v1922_v40 = vsub.f32 1.0, %v1921_v48 }
 0x8ae   :  { %2551 = vmatmul.msk.f32.gmra.mxu1 %vm57_vm0, %v1830_v21 }
 0x8af   :  { %v1923_v28 = vmul.f32 %v2754_v45, %v1922_v40 }
 0x8b1   :  { %v1924_v23 = vadd.f32 %v2754_v45, %v1923_v28 }
 0x8b3   :  { %v1754_v31 = vpop.permute.xlu1 %1753  ;;  %v3406_v52 = vsel %vm1925_vm4, %v2754_v45, %v1924_v23  ;;  %v3473_v45 = vld [vmem:[%s3689_s7] ss:$0 sm:$0xff] }
 0x8b4   :  { %v1817_v53 = vsel %vm161_vm1, %v3102_v26, %v1754_v31 }
 0x8b5   :  { %v1824_v37 = vsel %vm1821_vm2, %v1817_v53, %v1778_v46 }
 0x8bb   :  { %v1756_v54 = vpop.permute.xlu1 %1755 }
 0x8bc   :  { %v1818_v61 = vsel %vm161_vm1, %v3077_v50, %v1756_v54 }
 0x8bd   :  { %v1825_v17 = vsel %vm1821_vm2, %v1818_v61, %v1780_v49 }
 0x8c3   :  { %v1758_v42 = vpop.permute.xlu1 %1757 }
 0x8c4   :  { %v1819_v26 = vsel %vm161_vm1, %v3079_v51, %v1758_v42  ;;  %v2652_v51 = vld [vmem:[%s3687_s5] ss:$0 sm:$0xff] }
 0x8c5   :  { %v1826_v8 = vsel %vm1821_vm2, %v1819_v26, %v1782_v0 }
 0x8cb   :  { %v1760_v50 = vpop.permute.xlu1 %1759 }
 0x8cc   :  { %v1820_v10 = vsel %vm161_vm1, %v3108_v2, %v1760_v50 }
 0x8cd   :  { %v1802_v55 = vpop.permute.xlu2 %1801  ;;  %v1827_v24 = vsel %vm1821_vm2, %v1820_v10, %v1784_v11 }
 0x8ce   :  { %v1831_v60 = vsel %vm1828_vm3, %v1824_v37, %v1802_v55 }
 0x8cf   :  { %2552 = vmatmul.msk.f32.gmra.mxu1 %vm57_vm0, %v1831_v60 }
 0x8d5   :  { %v1804_v62 = vpop.permute.xlu2 %1803 }
 0x8d6   :  { %v1832_v12 = vsel %vm1828_vm3, %v1825_v17, %v1804_v62 }
 0x8d7   :  { %2553 = vmatmul.msk.f32.gmra.mxu1 %vm57_vm0, %v1832_v12 }
 0x8dd   :  { %v1806_v63 = vpop.permute.xlu2 %1805 }
 0x8de   :  { %v1833_v9 = vsel %vm1828_vm3, %v1826_v8, %v1806_v63 }
 0x8df   :  { %2554 = vmatmul.msk.f32.gmra.mxu1 %vm57_vm0, %v1833_v9 }
 0x8fd   :  { %v1808_v6 = vpop.permute.xlu2 %1807 }
 0x8fe   :  { %v1834_v30 = vsel %vm1828_vm3, %v1827_v24, %v1808_v6 }
 0x8ff   :  { %2555 = vmatmul.msk.f32.gmra.mxu1 %vm57_vm0, %v1834_v30 }
 0x922   :  { %v1878_v35 = vpop.f32.mrf.mxu1 }
 0x923   :  { %v1879_v15 = vadd.f32 %v2652_v51, %v1878_v35 }
 0x925   :  { %v3367_v57 = vadd.f32 %v2779_v4, %v1879_v15 }
 0x927   :  { %v1902_v2 = vsel %vm57_vm0, %v3367_v57, 0.0 }
 0x928   :  { %1903 = vadd.xlane.f32.xlu1 %v1902_v2  ;;  %v2064_v2 = vld [vmem:[%s3690_s8 + $0x18] sm:$0xff] }
 0x929   :  { %2099 = vmatpush.msra.mxu2 %v2064_v2 }
 0x92b   :  { %v1881_v56 = vpop.f32.mrf.mxu1 }
 0x92c   :  { %v1882_v16 = vadd.f32 %v2652_v51, %v1881_v56  ;;  %v2063_v56 = vld [vmem:[%s3690_s8 + $0x10] sm:$0xff] }
 0x92d   :  { %2100 = vmatpush.msra.mxu2 %v2063_v56 }
 0x92e   :  { %v3374_v18 = vadd.f32 %v2780_v41, %v1882_v16  ;;  %v2062_v16 = vld [vmem:[%s3690_s8 + $0x8] sm:$0xff]  ;;  %v2061_v41 = vld [vmem:[%s3690_s8] sm:$0xff] }
 0x92f   :  { %2101 = vmatpush.msra.mxu2 %v2062_v16 }
 0x930   :  { %v1905_v19 = vsel %vm57_vm0, %v3374_v18, 0.0 }
 0x931   :  { %1906 = vadd.xlane.f32.xlu0 %v1905_v19  ;;  %2102 = vmatpush.msra.mxu2 %v2061_v41 }
 0x94c   :  { %v1884_v29 = vpop.f32.mrf.mxu1 }
 0x94d   :  { %v1885_v20 = vadd.f32 %v2652_v51, %v1884_v29 }
 0x94f   :  { %v3381_v7 = vadd.f32 %v2781_v34, %v1885_v20 }
 0x951   :  { %v1908_v1 = vsel %vm57_vm0, %v3381_v7, 0.0 }
 0x952   :  { %1909 = vadd.xlane.f32.xlu2 %v1908_v1 }
 0x954   :  { %v1887_v5 = vpop.f32.mrf.mxu1 }
 0x955   :  { %v1888_v33 = vadd.f32 %v2652_v51, %v1887_v5 }
 0x957   :  { %v3388_v47 = vadd.f32 %v2782_v36, %v1888_v33 }
 0x959   :  { %v1911_v38 = vsel %vm57_vm0, %v3388_v47, 0.0 }
 0x95a   :  { %1912 = vadd.xlane.f32.xlu1 %v1911_v38 }
 0x95c   :  { %v1890_v3 = vpop.f32.mrf.mxu1 }
 0x95d   :  { %v1891_v59 = vadd.f32 %v2652_v51, %v1890_v3 }
 0x95f   :  { %v3395_v58 = vadd.f32 %v2783_v32, %v1891_v59 }
 0x961   :  { %v1914_v13 = vsel %vm57_vm0, %v3395_v58, 0.0 }
 0x962   :  { %1915 = vadd.xlane.f32.xlu0 %v1914_v13 }
 0x97c   :  { %v1893_v39 = vpop.f32.mrf.mxu1 }
 0x97d   :  { %v1894_v43 = vadd.f32 %v2652_v51, %v1893_v39  ;;  %v3467_v39 = vld [vmem:[%s3688_s6] ss:$0 sm:$0xff] }
 0x97f   :  { %v3402_v14 = vadd.f32 %v2784_v22, %v1894_v43 }
 0x981   :  { %v1917_v44 = vsel %vm57_vm0, %v3402_v14, 0.0 }
 0x982   :  { %1918 = vadd.xlane.f32.xlu2 %v1917_v44 }
 0x99b   :  { %v1904_v25 = vpop.xlane.xlu1 %1903 }
 0x99c   :  { %v1927_v21 = vmul.f32 %v3406_v52, %v1904_v25 }
 0x99e   :  { %v3410_v31 = vsub.f32 %v3367_v57, %v1927_v21 }
 0x9a0   :  { %v1939_v46 = vmul.f32 %v3410_v31, %v3410_v31 }
 0x9a2   :  { %v1945_v53 = vsel %vm57_vm0, %v1939_v46, 0.0 }
 0x9a3   :  { %1946 = vadd.xlane.f32.xlu1 %v1945_v53 }
 0x9a4   :  { %v1907_v54 = vpop.xlane.xlu0 %1906 }
 0x9a5   :  { %v1928_v55 = vmul.f32 %v3406_v52, %v1907_v54 }
 0x9a7   :  { %v3417_v37 = vsub.f32 %v3374_v18, %v1928_v55 }
 0x9a9   :  { %v1940_v60 = vmul.f32 %v3417_v37, %v3417_v37 }
 0x9ab   :  { %v1948_v49 = vsel %vm57_vm0, %v1940_v60, 0.0 }
 0x9ac   :  { %1949 = vadd.xlane.f32.xlu0 %v1948_v49 }
 0x9c5   :  { %v1910_v61 = vpop.xlane.xlu2 %1909 }
 0x9c6   :  { %v1929_v62 = vmul.f32 %v3406_v52, %v1910_v61 }
 0x9c8   :  { %v3424_v17 = vsub.f32 %v3381_v7, %v1929_v62 }
 0x9ca   :  { %v1941_v12 = vmul.f32 %v3424_v17, %v3424_v17 }
 0x9cc   :  { %v1951_v42 = vsel %vm57_vm0, %v1941_v12, 0.0 }
 0x9cd   :  { %v1913_v26 = vpop.xlane.xlu1 %1912  ;;  %1952 = vadd.xlane.f32.xlu2 %v1951_v42 }
 0x9ce   :  { %v1930_v0 = vmul.f32 %v3406_v52, %v1913_v26 }
 0x9d0   :  { %v3431_v63 = vsub.f32 %v3388_v47, %v1930_v0 }
 0x9d2   :  { %v1942_v8 = vmul.f32 %v3431_v63, %v3431_v63 }
 0x9d4   :  { %v1954_v9 = vsel %vm57_vm0, %v1942_v8, 0.0 }
 0x9d5   :  { %1955 = vadd.xlane.f32.xlu1 %v1954_v9  ;;  %v1916_v50 = vpop.xlane.xlu0 %1915 }
 0x9d6   :  { %v1931_v10 = vmul.f32 %v3406_v52, %v1916_v50 }
 0x9d8   :  { %v3438_v11 = vsub.f32 %v3395_v58, %v1931_v10 }
 0x9da   :  { %v1943_v6 = vmul.f32 %v3438_v11, %v3438_v11 }
 0x9dc   :  { %v1957_v24 = vsel %vm57_vm0, %v1943_v6, 0.0 }
 0x9dd   :  { %1958 = vadd.xlane.f32.xlu0 %v1957_v24 }
 0x9f5   :  { %v1919_v30 = vpop.xlane.xlu2 %1918 }
 0x9f6   :  { %v1932_v51 = vmul.f32 %v3406_v52, %v1919_v30 }
 0x9f8   :  { %v3445_v35 = vsub.f32 %v3402_v14, %v1932_v51 }
 0x9fa   :  { %v1944_v15 = vmul.f32 %v3445_v35, %v3445_v35 }
 0x9fc   :  { %v1960_v4 = vsel %vm57_vm0, %v1944_v15, 0.0 }
 0x9fd   :  { %1961 = vadd.xlane.f32.xlu2 %v1960_v4 }
 0xa16   :  { %v1947_v19 = vpop.xlane.xlu1 %1946 }
 0xa17   :  { %v1963_v29 = vmul.f32 %v1947_v19, %v3406_v52 }
 0xa19   :  { %v1969_v20 = vadd.f32 1e-05, %v1963_v29 }
 0xa1b   :  { %2755 = vrsqrt.f32 %v1969_v20  ;;  %vm1981_vm6 = vweird.f32 %v1969_v20 }
 0xa1f   :  { %v1950_v34 = vpop.xlane.xlu0 %1949 }
 0xa20   :  { %v1964_v1 = vmul.f32 %v1950_v34, %v3406_v52 }
 0xa21   :  { %v2756_v5 = vpop.eup %2755 }
 0xa22   :  { %v1976_v33 = vmul.f32 %v2756_v5, %v1969_v20  ;;  %v1970_v36 = vadd.f32 1e-05, %v1964_v1  ;;  %vm1982_vm5 = vweird.f32 %v2756_v5 }
 0xa23   :  { %vm1983_vm7 = vmor %vm1981_vm6, %vm1982_vm5 }
 0xa24   :  { %v1977_v38 = vmul.f32 %v2756_v5, %v1976_v33  ;;  %2757 = vrsqrt.f32 %v1970_v36  ;;  %vm1991_vm9 = vweird.f32 %v1970_v36 }
 0xa26   :  { %v1978_v3 = vmul.f32 0.5, %v1977_v38 }
 0xa28   :  { %v1979_v59 = vsub.f32 1.5, %v1978_v3 }
 0xa2a   :  { %v2758_v32 = vpop.eup %2757  ;;  %v1980_v13 = vmul.f32 %v2756_v5, %v1979_v59 }
 0xa2b   :  { %v1986_v43 = vmul.f32 %v2758_v32, %v1970_v36  ;;  %vm1992_vm8 = vweird.f32 %v2758_v32 }
 0xa2c   :  { %v1984_v22 = vsel %vm1983_vm7, %v2756_v5, %v1980_v13  ;;  %vm1993_vm10 = vmor %vm1991_vm9, %vm1992_vm8 }
 0xa2d   :  { %v2035_v27 = vmul.f32 %v1984_v22, %v3410_v31  ;;  %v1987_v44 = vmul.f32 %v2758_v32, %v1986_v43 }
 0xa2f   :  { %v2045_v48 = vmul.f32 %v3467_v39, %v2035_v27  ;;  %v1988_v40 = vmul.f32 0.5, %v1987_v44 }
 0xa31   :  { %v1989_v28 = vsub.f32 1.5, %v1988_v40  ;;  %v2055_v23 = vadd.f32 %v3473_v45, %v2045_v48 }
 0xa33   :  { %v1990_v25 = vmul.f32 %v2758_v32, %v1989_v28  ;;  %2556 = vmatmul.msk.f32.vlgmr.msra.gmra.mxu2 %vm57_vm0, %v2055_v23 }
 0xa35   :  { %v1994_v21 = vsel %vm1993_vm10, %v2758_v32, %v1990_v25 }
 0xa36   :  { %v2036_v31 = vmul.f32 %v1994_v21, %v3417_v37 }
 0xa38   :  { %v2046_v46 = vmul.f32 %v3467_v39, %v2036_v31 }
 0xa3a   :  { %v2056_v53 = vadd.f32 %v3473_v45, %v2046_v46  ;;  %v2400_v46 = vld [vmem:[%s3692_s10 + $0x70] sm:$0xff] }
 0xa3c   :  { %2557 = vmatmul.msk.f32.gmra.mxu2 %vm57_vm0, %v2056_v53 }
 0xa40   :  { %v1953_v54 = vpop.xlane.xlu2 %1952 }
 0xa41   :  { %v1965_v55 = vmul.f32 %v1953_v54, %v3406_v52  ;;  %v2397_v54 = vld [vmem:[%s3692_s10 + $0x58] sm:$0xff] }
 0xa43   :  { %v1971_v60 = vadd.f32 1e-05, %v1965_v55 }
 0xa45   :  { %2759 = vrsqrt.f32 %v1971_v60  ;;  %vm2001_vm12 = vweird.f32 %v1971_v60 }
 0xa48   :  { %v1956_v49 = vpop.xlane.xlu1 %1955 }
 0xa49   :  { %v1966_v61 = vmul.f32 %v1956_v49, %v3406_v52 }
 0xa4b   :  { %v2760_v62 = vpop.eup %2759  ;;  %v1972_v12 = vadd.f32 1e-05, %v1966_v61  ;;  %v2395_v61 = vld [vmem:[%s3692_s10 + $0x48] sm:$0xff] }
 0xa4c   :  { %v1996_v42 = vmul.f32 %v2760_v62, %v1971_v60  ;;  %vm2002_vm11 = vweird.f32 %v2760_v62  ;;  %v2396_v60 = vld [vmem:[%s3692_s10 + $0x50] sm:$0xff] }
 0xa4d   :  { %2761 = vrsqrt.f32 %v1972_v12  ;;  %vm2003_vm13 = vmor %vm2001_vm12, %vm2002_vm11  ;;  %vm2011_vm15 = vweird.f32 %v1972_v12 }
 0xa4e   :  { %v1997_v26 = vmul.f32 %v2760_v62, %v1996_v42 }
 0xa50   :  { %v1998_v37 = vmul.f32 0.5, %v1997_v26  ;;  %v1959_v0 = vpop.xlane.xlu0 %1958  ;;  %v2393_v26 = vld [vmem:[%s3692_s10 + $0x38] sm:$0xff] }
 0xa51   :  { %v1967_v8 = vmul.f32 %v1959_v0, %v3406_v52 }
 0xa52   :  { %v1999_v9 = vsub.f32 1.5, %v1998_v37 }
 0xa53   :  { %v2762_v50 = vpop.eup %2761  ;;  %v1973_v10 = vadd.f32 1e-05, %v1967_v8 }
 0xa54   :  { %v2000_v6 = vmul.f32 %v2760_v62, %v1999_v9  ;;  %v2006_v24 = vmul.f32 %v2762_v50, %v1972_v12  ;;  %vm2012_vm14 = vweird.f32 %v2762_v50  ;;  %v2394_v12 = vld [vmem:[%s3692_s10 + $0x40] sm:$0xff] }
 0xa55   :  { %2763 = vrsqrt.f32 %v1973_v10  ;;  %vm2013_vm1 = vmor %vm2011_vm15, %vm2012_vm14  ;;  %vm2021_vm3 = vweird.f32 %v1973_v10 }
 0xa56   :  { %v2004_v30 = vsel %vm2003_vm13, %v2760_v62, %v2000_v6  ;;  %v2007_v51 = vmul.f32 %v2762_v50, %v2006_v24 }
 0xa57   :  { %v2037_v15 = vmul.f32 %v2004_v30, %v3424_v17  ;;  %v2391_v30 = vld [vmem:[%s3692_s10 + $0x28] sm:$0xff] }
 0xa58   :  { %v2008_v4 = vmul.f32 0.5, %v2007_v51 }
 0xa59   :  { %v2047_v2 = vmul.f32 %v3467_v39, %v2037_v15 }
 0xa5a   :  { %v2009_v56 = vsub.f32 1.5, %v2008_v4 }
 0xa5b   :  { %v2764_v16 = vpop.eup %2763  ;;  %v2057_v41 = vadd.f32 %v3473_v45, %v2047_v2  ;;  %v2390_v2 = vld [vmem:[%s3692_s10 + $0x20] sm:$0xff] }
 0xa5c   :  { %v2010_v19 = vmul.f32 %v2762_v50, %v2009_v56  ;;  %v2016_v29 = vmul.f32 %v2764_v16, %v1973_v10  ;;  %vm2022_vm2 = vweird.f32 %v2764_v16 }
 0xa5d   :  { %2558 = vmatmul.msk.f32.gmra.mxu2 %vm57_vm0, %v2057_v41  ;;  %vm2023_vm4 = vmor %vm2021_vm3, %vm2022_vm2 }
 0xa5e   :  { %v2014_v20 = vsel %vm2013_vm1, %v2762_v50, %v2010_v19  ;;  %v2017_v34 = vmul.f32 %v2764_v16, %v2016_v29  ;;  %v2392_v50 = vld [vmem:[%s3692_s10 + $0x30] sm:$0xff]  ;;  %v2389_v19 = vld [vmem:[%s3692_s10 + $0x18] sm:$0xff] }
 0xa5f   :  { %v2038_v1 = vmul.f32 %v2014_v20, %v3431_v63 }
 0xa60   :  { %v2018_v5 = vmul.f32 0.5, %v2017_v34  ;;  %v2388_v34 = vld [vmem:[%s3692_s10 + $0x10] sm:$0xff] }
 0xa61   :  { %v2048_v17 = vmul.f32 %v3467_v39, %v2038_v1 }
 0xa62   :  { %v2019_v33 = vsub.f32 1.5, %v2018_v5 }
 0xa63   :  { %v2058_v36 = vadd.f32 %v3473_v45, %v2048_v17 }
 0xa64   :  { %v2020_v38 = vmul.f32 %v2764_v16, %v2019_v33 }
 0xa65   :  { %2559 = vmatmul.msk.f32.gmra.mxu2 %vm57_vm0, %v2058_v36  ;;  %v2387_v36 = vld [vmem:[%s3692_s10 + $0x8] sm:$0xff] }
 0xa66   :  { %v2024_v3 = vsel %vm2023_vm4, %v2764_v16, %v2020_v38 }
 0xa67   :  { %v2039_v59 = vmul.f32 %v2024_v3, %v3438_v11 }
 0xa69   :  { %v2049_v32 = vmul.f32 %v3467_v39, %v2039_v59 }
 0xa6b   :  { %v2059_v13 = vadd.f32 %v3473_v45, %v2049_v32  ;;  %v2386_v32 = vld [vmem:[%s3692_s10] sm:$0xff] }
 0xa6d   :  { %2560 = vmatmul.msk.f32.gmra.mxu2 %vm57_vm0, %v2059_v13 }
 0xa70   :  { %v1962_v63 = vpop.xlane.xlu2 %1961 }
 0xa71   :  { %v1968_v43 = vmul.f32 %v1962_v63, %v3406_v52  ;;  %v2401_v52 = vld [vmem:[%s3692_s10 + $0x78] sm:$0xff] }
 0xa72   :  { %2406 = vmatpush.msrb.mxu0 %v2401_v52  ;;  %2568 = vmatpush.msra.mxu3 %v2401_v52 }
 0xa73   :  { %v1974_v22 = vadd.f32 1e-05, %v1968_v43 }
 0xa74   :  { %2407 = vmatpush.msrb.mxu0 %v2400_v46  ;;  %2569 = vmatpush.msra.mxu3 %v2400_v46 }
 0xa75   :  { %2765 = vrsqrt.f32 %v1974_v22  ;;  %vm2031_vm6 = vweird.f32 %v1974_v22 }
 0xa7b   :  { %v2766_v27 = vpop.eup %2765 }
 0xa7c   :  { %v2026_v44 = vmul.f32 %v2766_v27, %v1974_v22  ;;  %vm2032_vm5 = vweird.f32 %v2766_v27 }
 0xa7d   :  { %vm2033_vm7 = vmor %vm2031_vm6, %vm2032_vm5 }
 0xa7e   :  { %v2027_v48 = vmul.f32 %v2766_v27, %v2026_v44 }
 0xa80   :  { %v2028_v40 = vmul.f32 0.5, %v2027_v48 }
 0xa82   :  { %v2029_v28 = vsub.f32 1.5, %v2028_v40 }
 0xa84   :  { %v2030_v23 = vmul.f32 %v2766_v27, %v2029_v28 }
 0xa86   :  { %v2034_v11 = vsel %vm2033_vm7, %v2766_v27, %v2030_v23 }
 0xa87   :  { %v2040_v25 = vmul.f32 %v2034_v11, %v3445_v35  ;;  %v2399_v35 = vld [vmem:[%s3692_s10 + $0x68] sm:$0xff] }
 0xa88   :  { %2408 = vmatpush.msrb.mxu0 %v2399_v35  ;;  %2570 = vmatpush.msra.mxu3 %v2399_v35 }
 0xa89   :  { %v2050_v21 = vmul.f32 %v3467_v39, %v2040_v25  ;;  %v3514_v39 = vld [vmem:[%s3691_s9] ss:$0 sm:$0xff]  ;;  %s2827_s9 = smov 128  }
 0xa8b   :  { %v2060_v31 = vadd.f32 %v3473_v45, %v2050_v21  ;;  %v2398_v45 = vld [vmem:[%s3692_s10 + $0x60] sm:$0xff] }
 0xa8c   :  { %2409 = vmatpush.msrb.mxu0 %v2398_v45  ;;  %2571 = vmatpush.msra.mxu3 %v2398_v45 }
 0xa8d   :  { %2561 = vmatmul.msk.f32.gmra.mxu2 %vm57_vm0, %v2060_v31 }
 0xa8e   :  { %2410 = vmatpush.msrb.mxu0 %v2397_v54  ;;  %2572 = vmatpush.msra.mxu3 %v2397_v54 }
 0xa90   :  { %2411 = vmatpush.msrb.mxu0 %v2396_v60  ;;  %2573 = vmatpush.msra.mxu3 %v2396_v60 }
 0xa92   :  { %2412 = vmatpush.msrb.mxu0 %v2395_v61  ;;  %2574 = vmatpush.msra.mxu3 %v2395_v61 }
 0xa94   :  { %2413 = vmatpush.msrb.mxu0 %v2394_v12  ;;  %2575 = vmatpush.msra.mxu3 %v2394_v12 }
 0xa96   :  { %2414 = vmatpush.msrb.mxu0 %v2393_v26  ;;  %2576 = vmatpush.msra.mxu3 %v2393_v26 }
 0xa98   :  { %2415 = vmatpush.msrb.mxu0 %v2392_v50  ;;  %2577 = vmatpush.msra.mxu3 %v2392_v50 }
 0xa9a   :  { %2416 = vmatpush.msrb.mxu0 %v2391_v30  ;;  %2578 = vmatpush.msra.mxu3 %v2391_v30 }
 0xa9c   :  { %2417 = vmatpush.msrb.mxu0 %v2390_v2  ;;  %2579 = vmatpush.msra.mxu3 %v2390_v2 }
 0xa9e   :  { %2418 = vmatpush.msrb.mxu0 %v2389_v19  ;;  %2580 = vmatpush.msra.mxu3 %v2389_v19 }
 0xaa0   :  { %2419 = vmatpush.msrb.mxu0 %v2388_v34  ;;  %2581 = vmatpush.msra.mxu3 %v2388_v34 }
 0xaa2   :  { %2420 = vmatpush.msrb.mxu0 %v2387_v36  ;;  %2582 = vmatpush.msra.mxu3 %v2387_v36 }
 0xaa4   :  { %2421 = vmatpush.msrb.mxu0 %v2386_v32  ;;  %2583 = vmatpush.msra.mxu3 %v2386_v32 }
 0xab6   :  { %v2104_v53 = vpop.f32.mrf.mxu2 }
 0xab7   :  { %v3523_v55 = vadd.f32 %v3514_v39, %v2104_v53 }
 0xab9   :  { %v3529_v49 = vmul.f32 0.70710677, %v3523_v55 }
 0xabb   :  { %v2134_v62 = vmul.f32 %v3529_v49, %v3529_v49 }
 0xabd   :  { %v3539_v42 = vmin.f32 %v2134_v62, 16.0 }
 0xabf   :  { %v2136_v37 = vmul.f32 2.1237322e-06, %v3539_v42  ;;  %v2147_v0 = vmul.f32 3.8918573e-05, %v3539_v42  ;;  %v2107_v8 = vpop.f32.mrf.mxu2 }
 0xac0   :  { %v3547_v9 = vadd.f32 %v3514_v39, %v2107_v8 }
 0xac1   :  { %v2137_v10 = vadd.f32 0.00028619796, %v2136_v37  ;;  %v2148_v6 = vadd.f32 0.001143296, %v2147_v0 }
 0xac2   :  { %v3553_v24 = vmul.f32 0.70710677, %v3547_v9 }
 0xac3   :  { %v2138_v51 = vmul.f32 %v2137_v10, %v3539_v42  ;;  %v2149_v15 = vmul.f32 %v2148_v6, %v3539_v42 }
 0xac4   :  { %v2174_v4 = vmul.f32 %v3553_v24, %v3553_v24 }
 0xac5   :  { %v2139_v56 = vadd.f32 0.0036580483, %v2138_v51  ;;  %v2150_v16 = vadd.f32 0.014752088, %v2149_v15 }
 0xac6   :  { %v2175_v41 = vmin.f32 %v2174_v4, 16.0 }
 0xac7   :  { %v2151_v29 = vmul.f32 %v2150_v16, %v3539_v42  ;;  %v2140_v5 = vmul.f32 %v2139_v56, %v3539_v42 }
 0xac8   :  { %v2176_v20 = vmul.f32 2.1237322e-06, %v2175_v41  ;;  %v2187_v1 = vmul.f32 3.8918573e-05, %v2175_v41 }
 0xac9   :  { %v2152_v17 = vadd.f32 0.112945676, %v2151_v29  ;;  %v2141_v63 = vadd.f32 0.05243302, %v2140_v5 }
 0xaca   :  { %v2177_v33 = vadd.f32 0.00028619796, %v2176_v20  ;;  %v2188_v38 = vadd.f32 0.001143296, %v2187_v1 }
 0xacb   :  { %v2153_v3 = vmul.f32 %v2152_v17, %v3539_v42  ;;  %v2142_v40 = vmul.f32 %v2141_v63, %v3539_v42 }
 0xacc   :  { %v2178_v59 = vmul.f32 %v2177_v33, %v2175_v41  ;;  %v2189_v13 = vmul.f32 %v2188_v38, %v2175_v41 }
 0xacd   :  { %v2154_v43 = vadd.f32 0.4994258, %v2153_v3  ;;  %v2143_v21 = vadd.f32 0.18741608, %v2142_v40 }
 0xace   :  { %v2179_v22 = vadd.f32 0.0036580483, %v2178_v59  ;;  %v2190_v27 = vadd.f32 0.014752088, %v2189_v13 }
 0xacf   :  { %v2155_v44 = vmul.f32 %v2154_v43, %v3539_v42  ;;  %v2144_v45 = vmul.f32 %v2143_v21, %v3539_v42 }
 0xad0   :  { %v2191_v48 = vmul.f32 %v2190_v27, %v2175_v41  ;;  %v2180_v23 = vmul.f32 %v2179_v22, %v2175_v41 }
 0xad1   :  { %v2156_v28 = vadd.f32 1.0, %v2155_v44  ;;  %v2145_v62 = vadd.f32 1.1283791, %v2144_v45 }
 0xad2   :  { %v2192_v11 = vadd.f32 0.112945676, %v2191_v48  ;;  %v2181_v31 = vadd.f32 0.05243302, %v2180_v23 }
 0xad3   :  { %2767 = vrcp.f32 %v2156_v28  ;;  %v2168_v12 = vand.u32 2147483648, %v2156_v28  ;;  %v2166_v37 = vand.u32 2147483647, %v2156_v28  ;;  %vm2162_vm9 = vweird.f32 %v2156_v28 }
 0xad4   :  { %v2193_v25 = vmul.f32 %v2192_v11, %v2175_v41  ;;  %v2182_v54 = vmul.f32 %v2181_v31, %v2175_v41  ;;  %v2146_v30 = vmul.f32 %v2145_v62, %v3529_v49 }
 0xad5   :  { %v2169_v10 = vor.u32 1.1754944e-38, %v2168_v12  ;;  %vm2167_vm11 = vcmp.eq.f32.partialorder %v2166_v37, 8.507059e+37 }
 0xad6   :  { %v2194_v52 = vadd.f32 0.4994258, %v2193_v25  ;;  %v2183_v0 = vadd.f32 0.18741608, %v2182_v54 }
 0xad8   :  { %v2195_v46 = vmul.f32 %v2194_v52, %v2175_v41  ;;  %v2184_v15 = vmul.f32 %v2183_v0, %v2175_v41  ;;  %v2122_v41 = vmul.f32 0.5, %v3523_v55 }
 0xad9   :  { %v2768_v35 = vpop.eup %2767 }
 0xada   :  { %v2158_v53 = vmul.f32 %v2768_v35, %v2156_v28  ;;  %v2196_v60 = vadd.f32 1.0, %v2195_v46  ;;  %vm2163_vm8 = vweird.f32 %v2768_v35  ;;  %v2185_v34 = vadd.f32 1.1283791, %v2184_v15 }
 0xadb   :  { %vm2164_vm10 = vmor %vm2162_vm9, %vm2163_vm8 }
 0xadc   :  { %v2159_v61 = vsub.f32 1.0, %v2158_v53  ;;  %2769 = vrcp.f32 %v2196_v60  ;;  %v2208_v1 = vand.u32 2147483648, %v2196_v60  ;;  %v2206_v49 = vand.u32 2147483647, %v2196_v60 }
 0xadd   :  { %vm2202_vm13 = vweird.f32 %v2196_v60  ;;  %v2186_v63 = vmul.f32 %v2185_v34, %v3553_v24  ;;  %v2123_v53 = vmul.f32 0.5, %v3547_v9 }
 0xade   :  { %v2160_v26 = vmul.f32 %v2768_v35, %v2159_v61  ;;  %v2209_v43 = vor.u32 1.1754944e-38, %v2208_v1  ;;  %vm2207_vm15 = vcmp.eq.f32.partialorder %v2206_v49, 8.507059e+37 }
 0xae0   :  { %v2161_v8 = vadd.f32 %v2768_v35, %v2160_v26  ;;  %v2110_v50 = vpop.f32.mrf.mxu2 }
 0xae1   :  { %v3584_v6 = vadd.f32 %v3514_v39, %v2110_v50 }
 0xae2   :  { %v2770_v42 = vpop.eup %2769  ;;  %v2165_v51 = vsel %vm2164_vm10, %v2768_v35, %v2161_v8 }
 0xae3   :  { %v2170_v4 = vsel %vm2167_vm11, %v2169_v10, %v2165_v51  ;;  %v3588_v2 = vmul.f32 0.70710677, %v3584_v6  ;;  %v2198_v56 = vmul.f32 %v2770_v42, %v2196_v60  ;;  %vm2203_vm12 = vweird.f32 %v2770_v42 }
 0xae4   :  { %v2171_v16 = vmul.f32 %v2170_v4, %v2146_v30  ;;  %vm2204_vm14 = vmor %vm2202_vm13, %vm2203_vm12 }
 0xae5   :  { %v2214_v19 = vmul.f32 %v3588_v2, %v3588_v2  ;;  %v2199_v29 = vsub.f32 1.0, %v2198_v56 }
 0xae6   :  { %v2562_v20 = vclamps-f32 %v2171_v16, 1.0 }
 0xae7   :  { %v3592_v5 = vmin.f32 %v2214_v19, 16.0  ;;  %v2200_v17 = vmul.f32 %v2770_v42, %v2199_v29 }
 0xae8   :  { %v2374_v33 = vadd.f32 1.0, %v2562_v20  ;;  %v2113_v36 = vpop.f32.mrf.mxu2 }
 0xae9   :  { %v2216_v38 = vmul.f32 2.1237322e-06, %v3592_v5  ;;  %v3597_v3 = vadd.f32 %v3514_v39, %v2113_v36  ;;  %v2201_v59 = vadd.f32 %v2770_v42, %v2200_v17  ;;  %v2227_v32 = vmul.f32 3.8918573e-05, %v3592_v5 }
 0xaea   :  { %v2380_v13 = vmul.f32 %v2374_v33, %v2122_v41 }
 0xaeb   :  { %v2217_v22 = vadd.f32 0.00028619796, %v2216_v38  ;;  %v3602_v27 = vmul.f32 0.70710677, %v3597_v3  ;;  %v2205_v55 = vsel %vm2204_vm14, %v2770_v42, %v2201_v59  ;;  %v2228_v48 = vadd.f32 0.001143296, %v2227_v32 }
 0xaec   :  { %2422 = vmatmul.f32.vlgmr.msrb.gmra.mxu0 %v2380_v13  ;;  %v2210_v44 = vsel %vm2207_vm15, %v2209_v43, %v2205_v55 }
 0xaed   :  { %v2218_v40 = vmul.f32 %v2217_v22, %v3592_v5  ;;  %v2254_v28 = vmul.f32 %v3602_v27, %v3602_v27  ;;  %v2211_v23 = vmul.f32 %v2210_v44, %v2186_v63  ;;  %v2229_v11 = vmul.f32 %v2228_v48, %v3592_v5 }
 0xaef   :  { %v3608_v24 = vmin.f32 %v2254_v28, 16.0  ;;  %v2563_v25 = vclamps-f32 %v2211_v23, 1.0  ;;  %v2230_v31 = vadd.f32 0.014752088, %v2229_v11  ;;  %v2219_v52 = vadd.f32 0.0036580483, %v2218_v40 }
 0xaf0   :  { %v2116_v21 = vpop.f32.mrf.mxu2 }
 0xaf1   :  { %v2256_v46 = vmul.f32 2.1237322e-06, %v3608_v24  ;;  %v2267_v35 = vmul.f32 3.8918573e-05, %v3608_v24  ;;  %v3613_v45 = vadd.f32 %v3514_v39, %v2116_v21  ;;  %v2375_v54 = vadd.f32 1.0, %v2563_v25 }
 0xaf2   :  { %v2231_v60 = vmul.f32 %v2230_v31, %v3592_v5  ;;  %v2220_v0 = vmul.f32 %v2219_v52, %v3592_v5 }
 0xaf3   :  { %v2257_v61 = vadd.f32 0.00028619796, %v2256_v46  ;;  %v2268_v62 = vadd.f32 0.001143296, %v2267_v35  ;;  %v3618_v12 = vmul.f32 0.70710677, %v3613_v45  ;;  %v2381_v26 = vmul.f32 %v2375_v54, %v2123_v53 }
 0xaf4   :  { %v2232_v37 = vadd.f32 0.112945676, %v2231_v60  ;;  %v2221_v4 = vadd.f32 0.05243302, %v2220_v0 }
 0xaf5   :  { %v2258_v8 = vmul.f32 %v2257_v61, %v3608_v24  ;;  %v2269_v50 = vmul.f32 %v2268_v62, %v3608_v24  ;;  %v2294_v10 = vmul.f32 %v3618_v12, %v3618_v12  ;;  %2425 = vmatmul.f32.gmra.mxu0 %v2381_v26 }
 0xaf6   :  { %v2233_v9 = vmul.f32 %v2232_v37, %v3592_v5  ;;  %v2222_v41 = vmul.f32 %v2221_v4, %v3592_v5 }
 0xaf7   :  { %v2259_v42 = vadd.f32 0.0036580483, %v2258_v8  ;;  %v2270_v30 = vadd.f32 0.014752088, %v2269_v50  ;;  %v3626_v51 = vmin.f32 %v2294_v10, 16.0 }
 0xaf8   :  { %v2234_v15 = vadd.f32 0.4994258, %v2233_v9  ;;  %v2223_v13 = vadd.f32 0.18741608, %v2222_v41 }
 0xaf9   :  { %v2271_v56 = vmul.f32 %v2270_v30, %v3608_v24  ;;  %v2296_v16 = vmul.f32 2.1237322e-06, %v3626_v51  ;;  %v2307_v29 = vmul.f32 3.8918573e-05, %v3626_v51  ;;  %v2260_v20 = vmul.f32 %v2259_v42, %v3608_v24 }
 0xafa   :  { %v2235_v19 = vmul.f32 %v2234_v15, %v3592_v5  ;;  %v2224_v28 = vmul.f32 %v2223_v13, %v3592_v5 }
 0xafb   :  { %v2272_v34 = vadd.f32 0.112945676, %v2271_v56  ;;  %v2297_v1 = vadd.f32 0.00028619796, %v2296_v16  ;;  %v2308_v49 = vadd.f32 0.001143296, %v2307_v29 }
 0xafc   :  { %v2236_v17 = vadd.f32 1.0, %v2235_v19  ;;  %v2261_v38 = vadd.f32 0.05243302, %v2260_v20  ;;  %v2225_v52 = vadd.f32 1.1283791, %v2224_v28 }
 0xafd   :  { %v2273_v33 = vmul.f32 %v2272_v34, %v3608_v24  ;;  %v2298_v36 = vmul.f32 %v2297_v1, %v3626_v51  ;;  %v2309_v32 = vmul.f32 %v2308_v49, %v3626_v51 }
 0xafe   :  { %2771 = vrcp.f32 %v2236_v17  ;;  %v2262_v55 = vmul.f32 %v2261_v38, %v3608_v24  ;;  %v2248_v46 = vand.u32 2147483648, %v2236_v17  ;;  %v2246_v60 = vand.u32 2147483647, %v2236_v17 }
 0xaff   :  { %v2274_v59 = vadd.f32 0.4994258, %v2273_v33  ;;  %v2310_v43 = vadd.f32 0.014752088, %v2309_v32  ;;  %v2299_v22 = vadd.f32 0.0036580483, %v2298_v36  ;;  %vm2242_vm2 = vweird.f32 %v2236_v17 }
 0xb00   :  { %v2263_v25 = vadd.f32 0.18741608, %v2262_v55  ;;  %v2226_v0 = vmul.f32 %v2225_v52, %v3588_v2  ;;  %v2249_v8 = vor.u32 1.1754944e-38, %v2248_v46  ;;  %vm2247_vm4 = vcmp.eq.f32.partialorder %v2246_v60, 8.507059e+37 }
 0xb01   :  { %v2275_v63 = vmul.f32 %v2274_v59, %v3608_v24  ;;  %v2311_v48 = vmul.f32 %v2310_v43, %v3626_v51  ;;  %v2300_v23 = vmul.f32 %v2299_v22, %v3626_v51 }
 0xb02   :  { %v2264_v62 = vmul.f32 %v2263_v25, %v3608_v24 }
 0xb03   :  { %v2276_v44 = vadd.f32 1.0, %v2275_v63  ;;  %v2312_v21 = vadd.f32 0.112945676, %v2311_v48  ;;  %v2301_v53 = vadd.f32 0.05243302, %v2300_v23 }
 0xb04   :  { %v2772_v40 = vpop.eup %2771  ;;  %v2265_v30 = vadd.f32 1.1283791, %v2264_v62 }
 0xb05   :  { %2773 = vrcp.f32 %v2276_v44  ;;  %v2238_v11 = vmul.f32 %v2772_v40, %v2236_v17  ;;  %v2313_v35 = vmul.f32 %v2312_v21, %v3626_v51  ;;  %vm2243_vm1 = vweird.f32 %v2772_v40 }
 0xb06   :  { %vm2244_vm3 = vmor %vm2242_vm2, %vm2243_vm1  ;;  %v2302_v9 = vmul.f32 %v2301_v53, %v3626_v51  ;;  %v2288_v15 = vand.u32 2147483648, %v2276_v44  ;;  %v2286_v16 = vand.u32 2147483647, %v2276_v44  ;;  %vm2282_vm6 = vweird.f32 %v2276_v44 }
 0xb07   :  { %v2239_v31 = vsub.f32 1.0, %v2238_v11  ;;  %v2314_v26 = vadd.f32 0.4994258, %v2313_v35  ;;  %v2124_v17 = vmul.f32 0.5, %v3584_v6  ;;  %v2266_v33 = vmul.f32 %v2265_v30, %v3602_v27 }
 0xb08   :  { %v2303_v34 = vadd.f32 0.18741608, %v2302_v9  ;;  %v2289_v49 = vor.u32 1.1754944e-38, %v2288_v15  ;;  %vm2287_vm8 = vcmp.eq.f32.partialorder %v2286_v16, 8.507059e+37  ;;  %v2125_v27 = vmul.f32 0.5, %v3597_v3 }
 0xb09   :  { %v2240_v54 = vmul.f32 %v2772_v40, %v2239_v31  ;;  %v2315_v50 = vmul.f32 %v2314_v26, %v3626_v51  ;;  %v2126_v9 = vmul.f32 0.5, %v3613_v45 }
 0xb0a   :  { %v2304_v13 = vmul.f32 %v2303_v34, %v3626_v51 }
 0xb0b   :  { %v2774_v61 = vpop.eup %2773  ;;  %v2241_v37 = vadd.f32 %v2772_v40, %v2240_v54  ;;  %v2316_v56 = vadd.f32 1.0, %v2315_v50 }
 0xb0c   :  { %v2278_v5 = vmul.f32 %v2774_v61, %v2276_v44  ;;  %vm2283_vm5 = vweird.f32 %v2774_v61  ;;  %v2305_v28 = vadd.f32 1.1283791, %v2304_v13 }
 0xb0d   :  { %v2245_v42 = vsel %vm2244_vm3, %v2772_v40, %v2241_v37  ;;  %2775 = vrcp.f32 %v2316_v56  ;;  %vm2284_vm7 = vmor %vm2282_vm6, %vm2283_vm5  ;;  %v2328_v25 = vand.u32 2147483648, %v2316_v56  ;;  %v2326_v51 = vand.u32 2147483647, %v2316_v56 }
 0xb0e   :  { %v2279_v10 = vsub.f32 1.0, %v2278_v5  ;;  %v2250_v4 = vsel %vm2247_vm4, %v2249_v8, %v2245_v42  ;;  %vm2322_vm10 = vweird.f32 %v2316_v56  ;;  %v2306_v3 = vmul.f32 %v2305_v28, %v3618_v12 }
 0xb0f   :  { %v2251_v29 = vmul.f32 %v2250_v4, %v2226_v0  ;;  %v2329_v54 = vor.u32 1.1754944e-38, %v2328_v25  ;;  %vm2327_vm12 = vcmp.eq.f32.partialorder %v2326_v51, 8.507059e+37 }
 0xb10   :  { %v2280_v24 = vmul.f32 %v2774_v61, %v2279_v10  ;;  %v2119_v19 = vpop.f32.mrf.mxu2 }
 0xb11   :  { %v3648_v2 = vadd.f32 %v3514_v39, %v2119_v19  ;;  %v2564_v1 = vclamps-f32 %v2251_v29, 1.0 }
 0xb12   :  { %v2281_v20 = vadd.f32 %v2774_v61, %v2280_v24 }
 0xb13   :  { %v3652_v41 = vmul.f32 0.70710677, %v3648_v2  ;;  %v2376_v38 = vadd.f32 1.0, %v2564_v1  ;;  %v2776_v43 = vpop.eup %2775 }
 0xb14   :  { %v2285_v36 = vsel %vm2284_vm7, %v2774_v61, %v2281_v20  ;;  %v2318_v55 = vmul.f32 %v2776_v43, %v2316_v56  ;;  %vm2323_vm9 = vweird.f32 %v2776_v43 }
 0xb15   :  { %v2290_v59 = vsel %vm2287_vm8, %v2289_v49, %v2285_v36  ;;  %v2334_v39 = vmul.f32 %v3652_v41, %v3652_v41  ;;  %v2382_v63 = vmul.f32 %v2376_v38, %v2124_v17  ;;  %vm2324_vm11 = vmor %vm2322_vm10, %vm2323_vm9 }
 0xb16   :  { %v2291_v32 = vmul.f32 %v2290_v59, %v2266_v33  ;;  %v2319_v23 = vsub.f32 1.0, %v2318_v55 }
 0xb17   :  { %v2335_v6 = vmin.f32 %v2334_v39, 16.0  ;;  %2428 = vmatmul.f32.gmra.mxu0 %v2382_v63  ;;  %v2127_v63 = vmul.f32 0.5, %v3648_v2 }
 0xb18   :  { %v2565_v22 = vclamps-f32 %v2291_v32, 1.0  ;;  %v2320_v52 = vmul.f32 %v2776_v43, %v2319_v23 }
 0xb19   :  { %v2336_v44 = vmul.f32 2.1237322e-06, %v2335_v6  ;;  %v2347_v48 = vmul.f32 3.8918573e-05, %v2335_v6 }
 0xb1a   :  { %v2377_v40 = vadd.f32 1.0, %v2565_v22  ;;  %v2321_v53 = vadd.f32 %v2776_v43, %v2320_v52  ;;  %v2656_v22 = vld [vmem:[%s3693_s11] ss:$0 sm:$0xff] }
 0xb1b   :  { %v2337_v11 = vadd.f32 0.00028619796, %v2336_v44  ;;  %v2348_v21 = vadd.f32 0.001143296, %v2347_v48 }
 0xb1c   :  { %v2383_v31 = vmul.f32 %v2377_v40, %v2125_v27  ;;  %v2325_v62 = vsel %vm2324_vm11, %v2776_v43, %v2321_v53 }
 0xb1d   :  { %v2338_v46 = vmul.f32 %v2337_v11, %v2335_v6  ;;  %v2349_v35 = vmul.f32 %v2348_v21, %v2335_v6  ;;  %v2330_v26 = vsel %vm2327_vm12, %v2329_v54, %v2325_v62 }
 0xb1e   :  { %2431 = vmatmul.f32.vlgmr.msra.gmra.mxu3 %v2383_v31  ;;  %v2331_v37 = vmul.f32 %v2330_v26, %v2306_v3 }
 0xb1f   :  { %v2350_v60 = vadd.f32 0.014752088, %v2349_v35  ;;  %v2339_v61 = vadd.f32 0.0036580483, %v2338_v46 }
 0xb20   :  { %v2566_v50 = vclamps-f32 %v2331_v37, 1.0 }
 0xb21   :  { %v2351_v5 = vmul.f32 %v2350_v60, %v2335_v6  ;;  %v2340_v8 = vmul.f32 %v2339_v61, %v2335_v6 }
 0xb22   :  { %v2378_v42 = vadd.f32 1.0, %v2566_v50 }
 0xb23   :  { %v2352_v0 = vadd.f32 0.112945676, %v2351_v5  ;;  %v2341_v15 = vadd.f32 0.05243302, %v2340_v8 }
 0xb24   :  { %v2384_v4 = vmul.f32 %v2378_v42, %v2126_v9 }
 0xb25   :  { %v2353_v10 = vmul.f32 %v2352_v0, %v2335_v6  ;;  %v2342_v12 = vmul.f32 %v2341_v15, %v2335_v6 }
 0xb26   :  { %2434 = vmatmul.f32.gmra.mxu3 %v2384_v4 }
 0xb27   :  { %v2354_v30 = vadd.f32 0.4994258, %v2353_v10  ;;  %v2343_v16 = vadd.f32 0.18741608, %v2342_v12 }
 0xb29   :  { %v2355_v56 = vmul.f32 %v2354_v30, %v2335_v6  ;;  %v2344_v29 = vmul.f32 %v2343_v16, %v2335_v6 }
 0xb2b   :  { %v2356_v24 = vadd.f32 1.0, %v2355_v56  ;;  %v2345_v17 = vadd.f32 1.1283791, %v2344_v29 }
 0xb2d   :  { %2777 = vrcp.f32 %v2356_v24  ;;  %v2368_v1 = vand.u32 2147483648, %v2356_v24  ;;  %v2366_v33 = vand.u32 2147483647, %v2356_v24  ;;  %vm2362_vm14 = vweird.f32 %v2356_v24 }
 0xb2e   :  { %v2346_v38 = vmul.f32 %v2345_v17, %v3652_v41 }
 0xb2f   :  { %v2369_v36 = vor.u32 1.1754944e-38, %v2368_v1  ;;  %vm2367_vm1 = vcmp.eq.f32.partialorder %v2366_v33, 8.507059e+37 }
 0xb33   :  { %v2778_v19 = vpop.eup %2777 }
 0xb34   :  { %v2358_v20 = vmul.f32 %v2778_v19, %v2356_v24  ;;  %vm2363_vm13 = vweird.f32 %v2778_v19 }
 0xb35   :  { %vm2364_vm15 = vmor %vm2362_vm14, %vm2363_vm13 }
 0xb36   :  { %v2359_v34 = vsub.f32 1.0, %v2358_v20 }
 0xb38   :  { %v2360_v49 = vmul.f32 %v2778_v19, %v2359_v34 }
 0xb3a   :  { %v2361_v45 = vadd.f32 %v2778_v19, %v2360_v49 }
 0xb3c   :  { %v2365_v59 = vsel %vm2364_vm15, %v2778_v19, %v2361_v45 }
 0xb3d   :  { %v2370_v39 = vsel %vm2367_vm1, %v2369_v36, %v2365_v59 }
 0xb3e   :  { %v2371_v32 = vmul.f32 %v2370_v39, %v2346_v38 }
 0xb40   :  { %v2567_v13 = vclamps-f32 %v2371_v32, 1.0 }
 0xb42   :  { %v2379_v43 = vadd.f32 1.0, %v2567_v13 }
 0xb44   :  { %v2385_v6 = vmul.f32 %v2379_v43, %v2127_v63 }
 0xb46   :  { %2437 = vmatmul.f32.gmra.mxu3 %v2385_v6 }
 0xb69   :  { %v2423_v55 = vpop.f32.mrf.mxu0 }
 0xb6a   :  { %v2424_v44 = vadd.f32 %v2656_v22, %v2423_v55 }
 0xb6c   :  { %v2441_v48 = vadd.f32 %v2424_v44, %v3367_v57 }
 0xb6e   :  { %2447 = vst.msk [vmem:[#allocation2] sm:$0xff] %vm57_vm0, %v2441_v48 }
 0xb72   :  { %v2426_v41 = vpop.f32.mrf.mxu0 }
 0xb73   :  { %v2427_v27 = vadd.f32 %v2656_v22, %v2426_v41 }
 0xb75   :  { %v2442_v40 = vadd.f32 %v2427_v27, %v3374_v18 }
 0xb77   :  { %2448 = vst.msk [vmem:[#allocation2 + $0x8] sm:$0xff] %vm57_vm0, %v2442_v40 }
 0xb94   :  { %v2429_v2 = vpop.f32.mrf.mxu0 }
 0xb95   :  { %v2430_v28 = vadd.f32 %v2656_v22, %v2429_v2 }
 0xb97   :  { %v2443_v23 = vadd.f32 %v2430_v28, %v3381_v7 }
 0xb99   :  { %2449 = vst.msk [vmem:[#allocation2 + $0x10] sm:$0xff] %vm57_vm0, %v2443_v23 }
 0xba1   :  { %v2432_v11 = vpop.f32.mrf.mxu3 }
 0xba2   :  { %v2433_v25 = vadd.f32 %v2656_v22, %v2432_v11 }
 0xba4   :  { %v2444_v21 = vadd.f32 %v2433_v25, %v3388_v47 }
 0xba6   :  { %2450 = vst.msk [vmem:[#allocation2 + $0x18] sm:$0xff] %vm57_vm0, %v2444_v21 }
 0xba9   :  { %v2435_v57 = vpop.f32.mrf.mxu3 }
 0xbaa   :  { %v2436_v31 = vadd.f32 %v2656_v22, %v2435_v57 }
 0xbac   :  { %v2445_v52 = vadd.f32 %v2436_v31, %v3395_v58 }
 0xbae   :  { %2451 = vst.msk [vmem:[#allocation2 + $0x20] sm:$0xff] %vm57_vm0, %v2445_v52 }
 0xbc9   :  { %v2438_v18 = vpop.f32.mrf.mxu3 }
 0xbca   :  { %v2439_v7 = vadd.f32 %v2656_v22, %v2438_v18 }
 0xbcc   :  { %v2446_v51 = vadd.f32 %v2439_v7, %v3402_v14 }
 0xbce   :  { %2452 = vst.msk [vmem:[#allocation2 + $0x28] sm:$0xff] %vm57_vm0, %v2446_v51 }
 0xbcf   :  { %2465 = dma.vmem_to_hbm [thread:$0]  %s2458_s15, 768, %s2460_s14, [#allocation3], %s2827_s9, %s2827_s9, %s2823_s17  }
 0xbd0   :  { %2809 = dma.done.wait [#allocation3], 768  }
 0xbd1   :  { %2810 = vsyncadd [#allocation3], 4294966528 }
 0xbd2   :  { %2470 = vsyncpa [#allocation3], 1 }

</bundles_post_ra>
